<compile_context>
chip_gen: v7x
topology: tpu7x:2x2x1
jax: 0.10.0
libtpu: 0.0.40
codegen_flags: <defaults>
</compile_context>

<pallas_src>
import numpy as np

import jax
import jax.numpy as jnp
from jax import lax
from jax.experimental import pallas as pl
from jax.experimental.pallas import tpu as pltpu


# ------------------------------ fused kernel -------------------------------

def fused_cnn_kernel(p1_ref, w1_ref, b1_ref, sel_ref, w2_ref, b2_ref,
                     wf1_ref, bf1_ref, wf2_ref, bf2_ref, o_ref):
    # Static sizes (trace-time python ints).
    P = sel_ref.shape[2]        # pooled rows per slab (B*49 padded to mult. of 16)
    R2 = sel_ref.shape[1]       # conv2 rows (32 per batch: 25 valid + 7 pad)
    B = o_ref.shape[0]

    # ---- conv1 as one matmul over all 4 pool-candidate slabs, + bias + relu
    h1 = jnp.dot(p1_ref[...], w1_ref[...],
                 preferred_element_type=jnp.float32)                 # (4P, 16)
    h1 = jnp.maximum(h1 + b1_ref[...], 0.0)

    # ---- 2x2 max-pool: elementwise max over the 4 slabs (aligned slices)
    pooled = jnp.maximum(jnp.maximum(h1[0:P], h1[P:2 * P]),
                         jnp.maximum(h1[2 * P:3 * P], h1[3 * P:4 * P]))  # (P, 16)
    pooled = pooled.astype(jnp.bfloat16)

    # ---- conv2: for each of the 9 taps, gather (selection matmul) then weight matmul
    acc = jnp.zeros((R2, 128), jnp.float32)
    for s in range(9):  # static unroll
        g = jnp.dot(sel_ref[s], pooled,
                    preferred_element_type=jnp.float32)              # (R2, 16) exact gather
        acc = acc + jnp.dot(g.astype(jnp.bfloat16), w2_ref[s],
                            preferred_element_type=jnp.float32)      # (R2, 128)
    h2 = jnp.maximum(acc + b2_ref[...], 0.0)                         # (R2, 128)

    # ---- zero padded spatial rows, then global mean over the 25 valid rows/batch
    row = lax.broadcasted_iota(jnp.int32, (R2, 128), 0)
    h2 = jnp.where((row % 32) < 25, h2, 0.0)
    feat = jnp.concatenate(
        [jnp.sum(h2[b * 32:(b + 1) * 32], axis=0, keepdims=True) for b in range(B)],
        axis=0) * (1.0 / 25.0)                                       # (B, 128)

    # ---- fc1 + relu + fc2 (fc2 padded to 128 output lanes)
    f1 = jnp.dot(feat.astype(jnp.bfloat16), wf1_ref[...],
                 preferred_element_type=jnp.float32) + bf1_ref[...]  # (B, 64)
    f1 = jnp.maximum(f1, 0.0)
    o_ref[...] = jnp.dot(f1.astype(jnp.bfloat16), wf2_ref[...],
                         preferred_element_type=jnp.float32) + bf2_ref[...]  # (B, 128)


# --------------------- one-time parameter preparation -----------------------

def prepare_params(params, batch):
    """Reshape / pad / bf16-cast weights and build the conv2 gather matrices.

    Runs ONCE outside jit -- none of this is on the per-call critical path.
    """
    w1, b1, w2, b2, wf1, bf1, wf2, bf2 = params
    P = ((batch * 49 + 15) // 16) * 16      # pooled rows padded (bf16 sublane pack)
    R2 = batch * 32                          # 25 conv2 positions padded to 32 / batch

    # conv1: OIHW -> (kh*kw*cin, cout), pad K 27 -> 32
    W1m = jnp.transpose(w1, (2, 3, 1, 0)).reshape(27, 16)
    W1m = jnp.pad(W1m, ((0, 5), (0, 0))).astype(jnp.bfloat16)        # (32, 16)
    b1r = b1.reshape(1, 16).astype(jnp.float32)

    # conv2: per-tap weight matrices (9, cin=16, cout=128)
    W2s = jnp.transpose(w2, (2, 3, 1, 0)).reshape(9, 16, 128).astype(jnp.bfloat16)
    b2r = b2.reshape(1, 128).astype(jnp.float32)

    # fc layers; fc2 padded to 128 lanes for a dense store
    Wf1m = wf1.T.astype(jnp.bfloat16)                                # (128, 64)
    bf1r = bf1.reshape(1, 64).astype(jnp.float32)
    Wf2m = jnp.pad(wf2.T, ((0, 0), (0, 118))).astype(jnp.bfloat16)   # (64, 128)
    bf2r = jnp.pad(bf2, (0, 118)).reshape(1, 128).astype(jnp.float32)

    # 0/1 selection matrices: conv2 output row (b, oi, oj) at tap (ki, kj)
    # reads pooled row b*49 + (oi+ki)*7 + (oj+kj).  Pad rows select nothing.
    sel = np.zeros((9, R2, P), np.float32)
    for ki in range(3):
        for kj in range(3):
            s = ki * 3 + kj
            for b in range(batch):
                for oi in range(5):
                    for oj in range(5):
                        sel[s, b * 32 + oi * 5 + oj,
                            b * 49 + (oi + ki) * 7 + (oj + kj)] = 1.0
    SEL = jnp.asarray(sel, jnp.bfloat16)

    return (W1m, b1r, SEL, W2s, b2r, Wf1m, bf1r, Wf2m, bf2r)


# --------------------------------- forward ----------------------------------

def cnn_forward(x, prep):
    W1m, b1r, SEL, W2s, b2r, Wf1m, bf1r, Wf2m, bf2r = prep
    B, C, H, W = x.shape
    assert C == 3 and H == 16 and W == 16
    P = SEL.shape[2]
    R2 = SEL.shape[1]

    # Thin glue: conv1 im2col, rows ordered (pool-slab, b, pi, pj); K 27 -> 32.
    x_nhwc = jnp.transpose(x, (0, 2, 3, 1))                          # (B,16,16,3)
    p1 = jnp.stack([x_nhwc[:, ki:ki + 14, kj:kj + 14, :]
                    for ki in range(3) for kj in range(3)], axis=3)  # (B,14,14,9,3)
    p1 = p1.reshape(B, 7, 2, 7, 2, 27)                               # (b,pi,di,pj,dj,col)
    p1 = jnp.transpose(p1, (2, 4, 0, 1, 3, 5)).reshape(4, B * 49, 27)
    p1 = jnp.pad(p1, ((0, 0), (0, P - B * 49), (0, 5)))
    P1 = p1.reshape(4 * P, 32).astype(jnp.bfloat16)                  # (4P, 32)

    flops = 2 * (4 * P * 32 * 16 + 9 * (R2 * P * 16 + R2 * 16 * 128)
                 + B * 128 * 64 + B * 64 * 128)
    bytes_accessed = sum(int(a.size * a.dtype.itemsize) for a in
                         (P1, W1m, b1r, SEL, W2s, b2r, Wf1m, bf1r, Wf2m, bf2r))
    bytes_accessed += B * 128 * 4

    vmem = pl.BlockSpec(memory_space=pltpu.MemorySpace.VMEM)
    out = pl.pallas_call(
        fused_cnn_kernel,
        out_shape=jax.ShapeDtypeStruct((B, 128), jnp.float32),
        in_specs=[vmem] * 10,
        out_specs=vmem,
        cost_estimate=pl.CostEstimate(flops=int(flops), transcendentals=0,
                                      bytes_accessed=int(bytes_accessed)),
    )(P1, W1m, b1r, SEL, W2s, b2r, Wf1m, bf1r, Wf2m, bf2r)

    return out[:, :10]


# ----------------------- params / reference / main --------------------------

def init_params(key):
    ks = jax.random.split(key, 8)

    def u(k, shape, fan_in):
        bound = 1.0 / (fan_in ** 0.5)
        return jax.random.uniform(k, shape, jnp.float32, -bound, bound)

    w1 = u(ks[0], (16, 3, 3, 3), 3 * 9)      # OIHW
    b1 = u(ks[1], (16,), 3 * 9)
    w2 = u(ks[2], (128, 16, 3, 3), 16 * 9)   # OIHW
    b2 = u(ks[3], (128,), 16 * 9)
    wf1 = u(ks[4], (64, 128), 128)           # torch Linear: (out, in)
    bf1 = u(ks[5], (64,), 128)
    wf2 = u(ks[6], (10, 64), 64)
    bf2 = u(ks[7], (10,), 64)
    return (w1, b1, w2, b2, wf1, bf1, wf2, bf2)


def reference(x, params):
    w1, b1, w2, b2, wf1, bf1, wf2, bf2 = params
    dn = ('NCHW', 'OIHW', 'NCHW')
    y = lax.conv_general_dilated(x, w1, (1, 1), 'VALID', dimension_numbers=dn)
    y = jnp.maximum(y + b1.reshape(1, -1, 1, 1), 0.0)
    y = lax.reduce_window(y, -jnp.inf, lax.max, (1, 1, 2, 2), (1, 1, 2, 2), 'VALID')
    y = lax.conv_general_dilated(y, w2, (1, 1), 'VALID', dimension_numbers=dn)
    y = jnp.maximum(y + b2.reshape(1, -1, 1, 1), 0.0)
    y = y.reshape(y.shape[0], -1, y.shape[2] ** 2).mean(axis=2)
    y = jnp.maximum(y @ wf1.T + bf1, 0.0)
    return y @ wf2.T + bf2


if __name__ == "__main__":
    key = jax.random.PRNGKey(0)
    pkey, xkey = jax.random.split(key)
    params = init_params(pkey)
    x = jax.random.normal(xkey, (2, 3, 16, 16), jnp.float32)

    prep = prepare_params(params, batch=x.shape[0])   # one-time weight prep
    fwd = jax.jit(cnn_forward)
    out = jax.block_until_ready(fwd(x, prep))
    assert out.shape == (2, 10), out.shape

    ref = reference(x, params)
    err = float(jnp.max(jnp.abs(out - ref)))
    assert jnp.allclose(out, ref, atol=5e-2, rtol=5e-2), f"max abs err {err}"
    print("KERNEL_OK")
</pallas_src>

<mosaic_0001>
module attributes {stable_mosaic.version = 11 : i64} {
  func.func @fused_cnn_kernel(%arg0: memref<448x32xbf16, #tpu.memory_space<vmem>>, %arg1: memref<32x16xbf16, #tpu.memory_space<vmem>>, %arg2: memref<1x16xf32, #tpu.memory_space<vmem>>, %arg3: memref<9x64x112xbf16, #tpu.memory_space<vmem>>, %arg4: memref<9x16x128xbf16, #tpu.memory_space<vmem>>, %arg5: memref<1x128xf32, #tpu.memory_space<vmem>>, %arg6: memref<128x64xbf16, #tpu.memory_space<vmem>>, %arg7: memref<1x64xf32, #tpu.memory_space<vmem>>, %arg8: memref<64x128xbf16, #tpu.memory_space<vmem>>, %arg9: memref<1x128xf32, #tpu.memory_space<vmem>>, %arg10: memref<2x128xf32, #tpu.memory_space<vmem>>) attributes {dimension_semantics = [], scalar_prefetch = 0 : i64, scratch_operands = 0 : i64, tpu.core_type = #tpu.core_type<tc>} {
    %c0 = arith.constant 0 : index
    %c0_0 = arith.constant 0 : index
    %0 = vector.load %arg0[%c0, %c0_0] : memref<448x32xbf16, #tpu.memory_space<vmem>>, vector<448x32xbf16>
    %c0_1 = arith.constant 0 : index
    %c0_2 = arith.constant 0 : index
    %1 = vector.load %arg1[%c0_1, %c0_2] : memref<32x16xbf16, #tpu.memory_space<vmem>>, vector<32x16xbf16>
    %cst = arith.constant dense<0.000000e+00> : vector<448x16xf32>
    %2 = tpu.matmul %0, %1, %cst {dimension_numbers = #tpu.dot_dimension_numbers<[1], [0], [0], [1], [0, 0, 1, 1], [], []>} : vector<448x32xbf16>, vector<32x16xbf16>, vector<448x16xf32> -> vector<448x16xf32>
    %c0_3 = arith.constant 0 : index
    %c0_4 = arith.constant 0 : index
    %3 = vector.load %arg2[%c0_3, %c0_4] : memref<1x16xf32, #tpu.memory_space<vmem>>, vector<1x16xf32>
    %4 = vector.broadcast %3 : vector<1x16xf32> to vector<448x16xf32>
    %5 = arith.addf %2, %4 : vector<448x16xf32>
    %cst_5 = arith.constant 0.000000e+00 : f32
    %6 = vector.broadcast %cst_5 : f32 to vector<448x16xf32>
    %7 = arith.maximumf %5, %6 : vector<448x16xf32>
    %8 = vector.extract_strided_slice %7 {offsets = [0, 0], sizes = [112, 16], strides = [1, 1]} : vector<448x16xf32> to vector<112x16xf32>
    %9 = vector.extract_strided_slice %7 {offsets = [112, 0], sizes = [112, 16], strides = [1, 1]} : vector<448x16xf32> to vector<112x16xf32>
    %10 = arith.maximumf %8, %9 : vector<112x16xf32>
    %11 = vector.extract_strided_slice %7 {offsets = [224, 0], sizes = [112, 16], strides = [1, 1]} : vector<448x16xf32> to vector<112x16xf32>
    %12 = vector.extract_strided_slice %7 {offsets = [336, 0], sizes = [112, 16], strides = [1, 1]} : vector<448x16xf32> to vector<112x16xf32>
    %13 = arith.maximumf %11, %12 : vector<112x16xf32>
    %14 = arith.maximumf %10, %13 : vector<112x16xf32>
    %15 = arith.truncf %14 : vector<112x16xf32> to vector<112x16xbf16>
    %cst_6 = arith.constant 0.000000e+00 : f32
    %16 = vector.broadcast %cst_6 : f32 to vector<64x128xf32>
    %c0_7 = arith.constant 0 : index
    %c0_8 = arith.constant 0 : index
    %c0_9 = arith.constant 0 : index
    %17 = vector.load %arg3[%c0_7, %c0_8, %c0_9] : memref<9x64x112xbf16, #tpu.memory_space<vmem>>, vector<1x64x112xbf16>
    %18 = vector.shape_cast %17 : vector<1x64x112xbf16> to vector<64x112xbf16>
    %cst_10 = arith.constant dense<0.000000e+00> : vector<64x16xf32>
    %19 = tpu.matmul %18, %15, %cst_10 {dimension_numbers = #tpu.dot_dimension_numbers<[1], [0], [0], [1], [0, 0, 1, 1], [], []>} : vector<64x112xbf16>, vector<112x16xbf16>, vector<64x16xf32> -> vector<64x16xf32>
    %20 = arith.truncf %19 : vector<64x16xf32> to vector<64x16xbf16>
    %c0_11 = arith.constant 0 : index
    %c0_12 = arith.constant 0 : index
    %c0_13 = arith.constant 0 : index
    %21 = vector.load %arg4[%c0_11, %c0_12, %c0_13] : memref<9x16x128xbf16, #tpu.memory_space<vmem>>, vector<1x16x128xbf16>
    %22 = vector.shape_cast %21 : vector<1x16x128xbf16> to vector<16x128xbf16>
    %cst_14 = arith.constant dense<0.000000e+00> : vector<64x128xf32>
    %23 = tpu.matmul %20, %22, %cst_14 {dimension_numbers = #tpu.dot_dimension_numbers<[1], [0], [0], [1], [0, 0, 1, 1], [], []>} : vector<64x16xbf16>, vector<16x128xbf16>, vector<64x128xf32> -> vector<64x128xf32>
    %24 = arith.addf %16, %23 : vector<64x128xf32>
    %c1 = arith.constant 1 : index
    %c0_15 = arith.constant 0 : index
    %c0_16 = arith.constant 0 : index
    %25 = vector.load %arg3[%c1, %c0_15, %c0_16] : memref<9x64x112xbf16, #tpu.memory_space<vmem>>, vector<1x64x112xbf16>
    %26 = vector.shape_cast %25 : vector<1x64x112xbf16> to vector<64x112xbf16>
    %cst_17 = arith.constant dense<0.000000e+00> : vector<64x16xf32>
    %27 = tpu.matmul %26, %15, %cst_17 {dimension_numbers = #tpu.dot_dimension_numbers<[1], [0], [0], [1], [0, 0, 1, 1], [], []>} : vector<64x112xbf16>, vector<112x16xbf16>, vector<64x16xf32> -> vector<64x16xf32>
    %28 = arith.truncf %27 : vector<64x16xf32> to vector<64x16xbf16>
    %c1_18 = arith.constant 1 : index
    %c0_19 = arith.constant 0 : index
    %c0_20 = arith.constant 0 : index
    %29 = vector.load %arg4[%c1_18, %c0_19, %c0_20] : memref<9x16x128xbf16, #tpu.memory_space<vmem>>, vector<1x16x128xbf16>
    %30 = vector.shape_cast %29 : vector<1x16x128xbf16> to vector<16x128xbf16>
    %cst_21 = arith.constant dense<0.000000e+00> : vector<64x128xf32>
    %31 = tpu.matmul %28, %30, %cst_21 {dimension_numbers = #tpu.dot_dimension_numbers<[1], [0], [0], [1], [0, 0, 1, 1], [], []>} : vector<64x16xbf16>, vector<16x128xbf16>, vector<64x128xf32> -> vector<64x128xf32>
    %32 = arith.addf %24, %31 : vector<64x128xf32>
    %c2 = arith.constant 2 : index
    %c0_22 = arith.constant 0 : index
    %c0_23 = arith.constant 0 : index
    %33 = vector.load %arg3[%c2, %c0_22, %c0_23] : memref<9x64x112xbf16, #tpu.memory_space<vmem>>, vector<1x64x112xbf16>
    %34 = vector.shape_cast %33 : vector<1x64x112xbf16> to vector<64x112xbf16>
    %cst_24 = arith.constant dense<0.000000e+00> : vector<64x16xf32>
    %35 = tpu.matmul %34, %15, %cst_24 {dimension_numbers = #tpu.dot_dimension_numbers<[1], [0], [0], [1], [0, 0, 1, 1], [], []>} : vector<64x112xbf16>, vector<112x16xbf16>, vector<64x16xf32> -> vector<64x16xf32>
    %36 = arith.truncf %35 : vector<64x16xf32> to vector<64x16xbf16>
    %c2_25 = arith.constant 2 : index
    %c0_26 = arith.constant 0 : index
    %c0_27 = arith.constant 0 : index
    %37 = vector.load %arg4[%c2_25, %c0_26, %c0_27] : memref<9x16x128xbf16, #tpu.memory_space<vmem>>, vector<1x16x128xbf16>
    %38 = vector.shape_cast %37 : vector<1x16x128xbf16> to vector<16x128xbf16>
    %cst_28 = arith.constant dense<0.000000e+00> : vector<64x128xf32>
    %39 = tpu.matmul %36, %38, %cst_28 {dimension_numbers = #tpu.dot_dimension_numbers<[1], [0], [0], [1], [0, 0, 1, 1], [], []>} : vector<64x16xbf16>, vector<16x128xbf16>, vector<64x128xf32> -> vector<64x128xf32>
    %40 = arith.addf %32, %39 : vector<64x128xf32>
    %c3 = arith.constant 3 : index
    %c0_29 = arith.constant 0 : index
    %c0_30 = arith.constant 0 : index
    %41 = vector.load %arg3[%c3, %c0_29, %c0_30] : memref<9x64x112xbf16, #tpu.memory_space<vmem>>, vector<1x64x112xbf16>
    %42 = vector.shape_cast %41 : vector<1x64x112xbf16> to vector<64x112xbf16>
    %cst_31 = arith.constant dense<0.000000e+00> : vector<64x16xf32>
    %43 = tpu.matmul %42, %15, %cst_31 {dimension_numbers = #tpu.dot_dimension_numbers<[1], [0], [0], [1], [0, 0, 1, 1], [], []>} : vector<64x112xbf16>, vector<112x16xbf16>, vector<64x16xf32> -> vector<64x16xf32>
    %44 = arith.truncf %43 : vector<64x16xf32> to vector<64x16xbf16>
    %c3_32 = arith.constant 3 : index
    %c0_33 = arith.constant 0 : index
    %c0_34 = arith.constant 0 : index
    %45 = vector.load %arg4[%c3_32, %c0_33, %c0_34] : memref<9x16x128xbf16, #tpu.memory_space<vmem>>, vector<1x16x128xbf16>
    %46 = vector.shape_cast %45 : vector<1x16x128xbf16> to vector<16x128xbf16>
    %cst_35 = arith.constant dense<0.000000e+00> : vector<64x128xf32>
    %47 = tpu.matmul %44, %46, %cst_35 {dimension_numbers = #tpu.dot_dimension_numbers<[1], [0], [0], [1], [0, 0, 1, 1], [], []>} : vector<64x16xbf16>, vector<16x128xbf16>, vector<64x128xf32> -> vector<64x128xf32>
    %48 = arith.addf %40, %47 : vector<64x128xf32>
    %c4 = arith.constant 4 : index
    %c0_36 = arith.constant 0 : index
    %c0_37 = arith.constant 0 : index
    %49 = vector.load %arg3[%c4, %c0_36, %c0_37] : memref<9x64x112xbf16, #tpu.memory_space<vmem>>, vector<1x64x112xbf16>
    %50 = vector.shape_cast %49 : vector<1x64x112xbf16> to vector<64x112xbf16>
    %cst_38 = arith.constant dense<0.000000e+00> : vector<64x16xf32>
    %51 = tpu.matmul %50, %15, %cst_38 {dimension_numbers = #tpu.dot_dimension_numbers<[1], [0], [0], [1], [0, 0, 1, 1], [], []>} : vector<64x112xbf16>, vector<112x16xbf16>, vector<64x16xf32> -> vector<64x16xf32>
    %52 = arith.truncf %51 : vector<64x16xf32> to vector<64x16xbf16>
    %c4_39 = arith.constant 4 : index
    %c0_40 = arith.constant 0 : index
    %c0_41 = arith.constant 0 : index
    %53 = vector.load %arg4[%c4_39, %c0_40, %c0_41] : memref<9x16x128xbf16, #tpu.memory_space<vmem>>, vector<1x16x128xbf16>
    %54 = vector.shape_cast %53 : vector<1x16x128xbf16> to vector<16x128xbf16>
    %cst_42 = arith.constant dense<0.000000e+00> : vector<64x128xf32>
    %55 = tpu.matmul %52, %54, %cst_42 {dimension_numbers = #tpu.dot_dimension_numbers<[1], [0], [0], [1], [0, 0, 1, 1], [], []>} : vector<64x16xbf16>, vector<16x128xbf16>, vector<64x128xf32> -> vector<64x128xf32>
    %56 = arith.addf %48, %55 : vector<64x128xf32>
    %c5 = arith.constant 5 : index
    %c0_43 = arith.constant 0 : index
    %c0_44 = arith.constant 0 : index
    %57 = vector.load %arg3[%c5, %c0_43, %c0_44] : memref<9x64x112xbf16, #tpu.memory_space<vmem>>, vector<1x64x112xbf16>
    %58 = vector.shape_cast %57 : vector<1x64x112xbf16> to vector<64x112xbf16>
    %cst_45 = arith.constant dense<0.000000e+00> : vector<64x16xf32>
    %59 = tpu.matmul %58, %15, %cst_45 {dimension_numbers = #tpu.dot_dimension_numbers<[1], [0], [0], [1], [0, 0, 1, 1], [], []>} : vector<64x112xbf16>, vector<112x16xbf16>, vector<64x16xf32> -> vector<64x16xf32>
    %60 = arith.truncf %59 : vector<64x16xf32> to vector<64x16xbf16>
    %c5_46 = arith.constant 5 : index
    %c0_47 = arith.constant 0 : index
    %c0_48 = arith.constant 0 : index
    %61 = vector.load %arg4[%c5_46, %c0_47, %c0_48] : memref<9x16x128xbf16, #tpu.memory_space<vmem>>, vector<1x16x128xbf16>
    %62 = vector.shape_cast %61 : vector<1x16x128xbf16> to vector<16x128xbf16>
    %cst_49 = arith.constant dense<0.000000e+00> : vector<64x128xf32>
    %63 = tpu.matmul %60, %62, %cst_49 {dimension_numbers = #tpu.dot_dimension_numbers<[1], [0], [0], [1], [0, 0, 1, 1], [], []>} : vector<64x16xbf16>, vector<16x128xbf16>, vector<64x128xf32> -> vector<64x128xf32>
    %64 = arith.addf %56, %63 : vector<64x128xf32>
    %c6 = arith.constant 6 : index
    %c0_50 = arith.constant 0 : index
    %c0_51 = arith.constant 0 : index
    %65 = vector.load %arg3[%c6, %c0_50, %c0_51] : memref<9x64x112xbf16, #tpu.memory_space<vmem>>, vector<1x64x112xbf16>
    %66 = vector.shape_cast %65 : vector<1x64x112xbf16> to vector<64x112xbf16>
    %cst_52 = arith.constant dense<0.000000e+00> : vector<64x16xf32>
    %67 = tpu.matmul %66, %15, %cst_52 {dimension_numbers = #tpu.dot_dimension_numbers<[1], [0], [0], [1], [0, 0, 1, 1], [], []>} : vector<64x112xbf16>, vector<112x16xbf16>, vector<64x16xf32> -> vector<64x16xf32>
    %68 = arith.truncf %67 : vector<64x16xf32> to vector<64x16xbf16>
    %c6_53 = arith.constant 6 : index
    %c0_54 = arith.constant 0 : index
    %c0_55 = arith.constant 0 : index
    %69 = vector.load %arg4[%c6_53, %c0_54, %c0_55] : memref<9x16x128xbf16, #tpu.memory_space<vmem>>, vector<1x16x128xbf16>
    %70 = vector.shape_cast %69 : vector<1x16x128xbf16> to vector<16x128xbf16>
    %cst_56 = arith.constant dense<0.000000e+00> : vector<64x128xf32>
    %71 = tpu.matmul %68, %70, %cst_56 {dimension_numbers = #tpu.dot_dimension_numbers<[1], [0], [0], [1], [0, 0, 1, 1], [], []>} : vector<64x16xbf16>, vector<16x128xbf16>, vector<64x128xf32> -> vector<64x128xf32>
    %72 = arith.addf %64, %71 : vector<64x128xf32>
    %c7 = arith.constant 7 : index
    %c0_57 = arith.constant 0 : index
    %c0_58 = arith.constant 0 : index
    %73 = vector.load %arg3[%c7, %c0_57, %c0_58] : memref<9x64x112xbf16, #tpu.memory_space<vmem>>, vector<1x64x112xbf16>
    %74 = vector.shape_cast %73 : vector<1x64x112xbf16> to vector<64x112xbf16>
    %cst_59 = arith.constant dense<0.000000e+00> : vector<64x16xf32>
    %75 = tpu.matmul %74, %15, %cst_59 {dimension_numbers = #tpu.dot_dimension_numbers<[1], [0], [0], [1], [0, 0, 1, 1], [], []>} : vector<64x112xbf16>, vector<112x16xbf16>, vector<64x16xf32> -> vector<64x16xf32>
    %76 = arith.truncf %75 : vector<64x16xf32> to vector<64x16xbf16>
    %c7_60 = arith.constant 7 : index
    %c0_61 = arith.constant 0 : index
    %c0_62 = arith.constant 0 : index
    %77 = vector.load %arg4[%c7_60, %c0_61, %c0_62] : memref<9x16x128xbf16, #tpu.memory_space<vmem>>, vector<1x16x128xbf16>
    %78 = vector.shape_cast %77 : vector<1x16x128xbf16> to vector<16x128xbf16>
    %cst_63 = arith.constant dense<0.000000e+00> : vector<64x128xf32>
    %79 = tpu.matmul %76, %78, %cst_63 {dimension_numbers = #tpu.dot_dimension_numbers<[1], [0], [0], [1], [0, 0, 1, 1], [], []>} : vector<64x16xbf16>, vector<16x128xbf16>, vector<64x128xf32> -> vector<64x128xf32>
    %80 = arith.addf %72, %79 : vector<64x128xf32>
    %c8 = arith.constant 8 : index
    %c0_64 = arith.constant 0 : index
    %c0_65 = arith.constant 0 : index
    %81 = vector.load %arg3[%c8, %c0_64, %c0_65] : memref<9x64x112xbf16, #tpu.memory_space<vmem>>, vector<1x64x112xbf16>
    %82 = vector.shape_cast %81 : vector<1x64x112xbf16> to vector<64x112xbf16>
    %cst_66 = arith.constant dense<0.000000e+00> : vector<64x16xf32>
    %83 = tpu.matmul %82, %15, %cst_66 {dimension_numbers = #tpu.dot_dimension_numbers<[1], [0], [0], [1], [0, 0, 1, 1], [], []>} : vector<64x112xbf16>, vector<112x16xbf16>, vector<64x16xf32> -> vector<64x16xf32>
    %84 = arith.truncf %83 : vector<64x16xf32> to vector<64x16xbf16>
    %c8_67 = arith.constant 8 : index
    %c0_68 = arith.constant 0 : index
    %c0_69 = arith.constant 0 : index
    %85 = vector.load %arg4[%c8_67, %c0_68, %c0_69] : memref<9x16x128xbf16, #tpu.memory_space<vmem>>, vector<1x16x128xbf16>
    %86 = vector.shape_cast %85 : vector<1x16x128xbf16> to vector<16x128xbf16>
    %cst_70 = arith.constant dense<0.000000e+00> : vector<64x128xf32>
    %87 = tpu.matmul %84, %86, %cst_70 {dimension_numbers = #tpu.dot_dimension_numbers<[1], [0], [0], [1], [0, 0, 1, 1], [], []>} : vector<64x16xbf16>, vector<16x128xbf16>, vector<64x128xf32> -> vector<64x128xf32>
    %88 = arith.addf %80, %87 : vector<64x128xf32>
    %c0_71 = arith.constant 0 : index
    %c0_72 = arith.constant 0 : index
    %89 = vector.load %arg5[%c0_71, %c0_72] : memref<1x128xf32, #tpu.memory_space<vmem>>, vector<1x128xf32>
    %90 = vector.broadcast %89 : vector<1x128xf32> to vector<64x128xf32>
    %91 = arith.addf %88, %90 : vector<64x128xf32>
    %cst_73 = arith.constant 0.000000e+00 : f32
    %92 = vector.broadcast %cst_73 : f32 to vector<64x128xf32>
    %93 = arith.maximumf %91, %92 : vector<64x128xf32>
    %94 = tpu.iota {dimensions = array<i32: 0>} : vector<64x128xi32>
    %c32_i32 = arith.constant 32 : i32
    %c0_i32 = arith.constant 0 : i32
    %95 = arith.cmpi eq, %c32_i32, %c0_i32 : i32
    %c1_i32 = arith.constant 1 : i32
    %96 = arith.select %95, %c1_i32, %c32_i32 : i32
    %97 = vector.broadcast %96 : i32 to vector<64x128xi32>
    %98 = arith.remsi %94, %97 : vector<64x128xi32>
    %c0_i32_74 = arith.constant 0 : i32
    %99 = vector.broadcast %c0_i32_74 : i32 to vector<64x128xi32>
    %100 = arith.cmpi ne, %98, %99 : vector<64x128xi32>
    %c0_i32_75 = arith.constant 0 : i32
    %101 = vector.broadcast %c0_i32_75 : i32 to vector<64x128xi32>
    %102 = arith.cmpi slt, %98, %101 : vector<64x128xi32>
    %c0_i32_76 = arith.constant 0 : i32
    %103 = arith.cmpi slt, %96, %c0_i32_76 : i32
    %104 = vector.broadcast %103 : i1 to vector<64x128xi1>
    %105 = vector.broadcast %104 : vector<64x128xi1> to vector<64x128xi1>
    %106 = arith.xori %102, %105 : vector<64x128xi1>
    %107 = arith.andi %106, %100 : vector<64x128xi1>
    %108 = vector.broadcast %96 : i32 to vector<64x128xi32>
    %109 = arith.addi %98, %108 : vector<64x128xi32>
    %110 = arith.select %107, %109, %98 : vector<64x128xi1>, vector<64x128xi32>
    %c25_i32 = arith.constant 25 : i32
    %111 = vector.broadcast %c25_i32 : i32 to vector<64x128xi32>
    %112 = arith.cmpi slt, %110, %111 : vector<64x128xi32>
    %cst_77 = arith.constant 0.000000e+00 : f32
    %113 = vector.broadcast %cst_77 : f32 to vector<64x128xf32>
    %114 = arith.select %112, %93, %113 : vector<64x128xi1>, vector<64x128xf32>
    %115 = vector.extract_strided_slice %114 {offsets = [0, 0], sizes = [32, 128], strides = [1, 1]} : vector<64x128xf32> to vector<32x128xf32>
    %cst_78 = arith.constant dense<0.000000e+00> : vector<128xf32>
    %116 = vector.multi_reduction <add>, %115, %cst_78 [0] : vector<32x128xf32> to vector<128xf32>
    %117 = vector.shape_cast %116 : vector<128xf32> to vector<1x128xf32>
    %118 = vector.extract_strided_slice %114 {offsets = [32, 0], sizes = [32, 128], strides = [1, 1]} : vector<64x128xf32> to vector<32x128xf32>
    %cst_79 = arith.constant dense<0.000000e+00> : vector<128xf32>
    %119 = vector.multi_reduction <add>, %118, %cst_79 [0] : vector<32x128xf32> to vector<128xf32>
    %120 = vector.shape_cast %119 : vector<128xf32> to vector<1x128xf32>
    %121 = tpu.concatenate %117, %120 in 0 : vector<1x128xf32>, vector<1x128xf32> -> vector<2x128xf32>
    %cst_80 = arith.constant 4.000000e-02 : f32
    %122 = vector.broadcast %cst_80 : f32 to vector<2x128xf32>
    %123 = arith.mulf %121, %122 : vector<2x128xf32>
    %124 = arith.truncf %123 : vector<2x128xf32> to vector<2x128xbf16>
    %c0_81 = arith.constant 0 : index
    %c0_82 = arith.constant 0 : index
    %125 = vector.load %arg6[%c0_81, %c0_82] : memref<128x64xbf16, #tpu.memory_space<vmem>>, vector<128x64xbf16>
    %cst_83 = arith.constant dense<0.000000e+00> : vector<2x64xf32>
    %126 = tpu.matmul %124, %125, %cst_83 {dimension_numbers = #tpu.dot_dimension_numbers<[1], [0], [0], [1], [0, 0, 1, 1], [], []>} : vector<2x128xbf16>, vector<128x64xbf16>, vector<2x64xf32> -> vector<2x64xf32>
    %c0_84 = arith.constant 0 : index
    %c0_85 = arith.constant 0 : index
    %127 = vector.load %arg7[%c0_84, %c0_85] : memref<1x64xf32, #tpu.memory_space<vmem>>, vector<1x64xf32>
    %128 = vector.broadcast %127 : vector<1x64xf32> to vector<2x64xf32>
    %129 = arith.addf %126, %128 : vector<2x64xf32>
    %cst_86 = arith.constant 0.000000e+00 : f32
    %130 = vector.broadcast %cst_86 : f32 to vector<2x64xf32>
    %131 = arith.maximumf %129, %130 : vector<2x64xf32>
    %132 = arith.truncf %131 : vector<2x64xf32> to vector<2x64xbf16>
    %c0_87 = arith.constant 0 : index
    %c0_88 = arith.constant 0 : index
    %133 = vector.load %arg8[%c0_87, %c0_88] : memref<64x128xbf16, #tpu.memory_space<vmem>>, vector<64x128xbf16>
    %cst_89 = arith.constant dense<0.000000e+00> : vector<2x128xf32>
    %134 = tpu.matmul %132, %133, %cst_89 {dimension_numbers = #tpu.dot_dimension_numbers<[1], [0], [0], [1], [0, 0, 1, 1], [], []>} : vector<2x64xbf16>, vector<64x128xbf16>, vector<2x128xf32> -> vector<2x128xf32>
    %c0_90 = arith.constant 0 : index
    %c0_91 = arith.constant 0 : index
    %135 = vector.load %arg9[%c0_90, %c0_91] : memref<1x128xf32, #tpu.memory_space<vmem>>, vector<1x128xf32>
    %136 = vector.broadcast %135 : vector<1x128xf32> to vector<2x128xf32>
    %137 = arith.addf %134, %136 : vector<2x128xf32>
    %c0_92 = arith.constant 0 : index
    %c0_93 = arith.constant 0 : index
    %138 = vector.load %arg10[%c0_92, %c0_93] : memref<2x128xf32, #tpu.memory_space<vmem>>, vector<2x128xf32>
    tpu.vector_store %arg10[%c0_92, %c0_93], %137 {strides = array<i32>} : memref<2x128xf32, #tpu.memory_space<vmem>>, vector<2x128xf32>,
    return
  }
}

</mosaic_0001>

<bundles_post_ra>
// kernel: cnn_forward.1
= control target key start
LH: loop header
LB: loop body
LE: loop exit
PB: predicated region body
PF: predicated region fallthrough
CT: control target
= control target key end

     0   :  { %vm256_vm0 = vcmask 261120   ;;  %s4709_s0 = inlined_call_operand.vmem [shape: bf16[448,32], index: 0, kind: input, shape index: {}]   ;;  %s4710_s1 = inlined_call_operand.vmem [shape: bf16[32,16], index: 1, kind: input, shape index: {}]   ;;  %s4711_s2 = inlined_call_operand.vmem [shape: f32[1,16], index: 2, kind: input, shape index: {}]   ;;  %s4712_s3 = inlined_call_operand.vmem [shape: bf16[9,64,112], index: 3, kind: input, shape index: {}]   ;;  %s4713_s4 = inlined_call_operand.vmem [shape: bf16[9,16,128], index: 4, kind: input, shape index: {}]   ;;  %s4714_s5 = inlined_call_operand.vmem [shape: f32[1,128], index: 5, kind: input, shape index: {}]   ;;  %s4715_s6 = inlined_call_operand.vmem [shape: bf16[128,64], index: 6, kind: input, shape index: {}]   ;;  %s4716_s7 = inlined_call_operand.vmem [shape: f32[1,64], index: 7, kind: input, shape index: {}]   ;;  %s4717_s8 = inlined_call_operand.vmem [shape: bf16[64,128], index: 8, kind: input, shape index: {}]   ;;  %s4718_s9 = inlined_call_operand.vmem [shape: f32[1,128], index: 9, kind: input, shape index: {}]   ;;  %s4719_s10 = inlined_call_operand.hbm [shape: f32[2,128], index: 10, kind: output, shape index: {}]  }
   0x1   :  { %v3807_v0 = vld [vmem:[%s4710_s1] sm:$0xff]   ;;  %v3808_v1 = vld [vmem:[%s4710_s1 + $0x8] sm:$0xff]   ;;  %v3811_v4 = vld [vmem:[%s4709_s0 + $0x10] sm:$0xff]  }
   0x2   :  { %3360 = vmatprep.subr.bf16.mxu0 %v3807_v0  ;;  %v3809_v2 = vld [vmem:[%s4709_s0] sm:$0xff]   ;;  %v3810_v3 = vld [vmem:[%s4709_s0 + $0x8] sm:$0xff]   ;;  %v3812_v5 = vld [vmem:[%s4709_s0 + $0x18] sm:$0xff]  }
   0x3   :  { %3361 = vmatpush3.bf16.msra.mxu0 %v3807_v0  ;;  %3364 = vmatprep.mubr.msk.bf16.mxu0 %vm256_vm0, %v3809_v2  ;;  %v3813_v6 = vld [vmem:[%s4709_s0 + $0x20] sm:$0xff]   ;;  %v3814_v7 = vld [vmem:[%s4709_s0 + $0x28] sm:$0xff]   ;;  %v3815_v8 = vld [vmem:[%s4709_s0 + $0x30] sm:$0xff]  }
   0x4   :  { %3362 = vmatprep.subr.bf16.mxu0 %v3808_v1  ;;  %v3816_v9 = vld [vmem:[%s4709_s0 + $0x38] sm:$0xff]   ;;  %v3817_v10 = vld [vmem:[%s4709_s0 + $0x40] sm:$0xff]   ;;  %v3818_v11 = vld [vmem:[%s4709_s0 + $0x48] sm:$0xff]  }
   0x5   :  { %v3819_v12 = vld [vmem:[%s4709_s0 + $0x50] sm:$0xff]   ;;  %v3820_v13 = vld [vmem:[%s4709_s0 + $0x58] sm:$0xff]   ;;  %v3821_v14 = vld [vmem:[%s4709_s0 + $0x60] sm:$0xff]  }
   0x6   :  { %v3822_v15 = vld [vmem:[%s4709_s0 + $0x68] sm:$0xff]   ;;  %v3823_v16 = vld [vmem:[%s4709_s0 + $0x70] sm:$0xff]   ;;  %v3824_v17 = vld [vmem:[%s4709_s0 + $0x78] sm:$0xff]  }
   0x7   :  { %3363 = vmatpush3.bf16.msra.mxu0 %v3808_v1  ;;  %v3825_v18 = vld [vmem:[%s4709_s0 + $0x80] sm:$0xff]  }
   0xa   :  { %3365 = vmatmul.mubr.msk.bf16.vlgmr.msra.gmra.mrb[0].mxu0 %vm256_vm0, %v3810_v3 }
   0xb   :  { %3368 = vmatprep.mubr.msk.bf16.mxu0 %vm256_vm0, %v3811_v4 }
  0x12   :  { %3369 = vmatmul.mubr.msk.bf16.gmra.mrb[4].mxu0 %vm256_vm0, %v3812_v5 }
  0x13   :  { %3372 = vmatprep.mubr.msk.bf16.mxu0 %vm256_vm0, %v3813_v6 }
  0x1a   :  { %3373 = vmatmul.mubr.msk.bf16.gmra.mrb[8].mxu0 %vm256_vm0, %v3814_v7 }
  0x1b   :  { %3376 = vmatprep.mubr.msk.bf16.mxu0 %vm256_vm0, %v3815_v8 }
  0x22   :  { %3377 = vmatmul.mubr.msk.bf16.gmra.mrb[12].mxu0 %vm256_vm0, %v3816_v9 }
  0x23   :  { %3380 = vmatprep.mubr.msk.bf16.mxu0 %vm256_vm0, %v3817_v10 }
  0x2a   :  { %3381 = vmatmul.mubr.msk.bf16.gmra.mrb[16].mxu0 %vm256_vm0, %v3818_v11 }
  0x2b   :  { %3384 = vmatprep.mubr.msk.bf16.mxu0 %vm256_vm0, %v3819_v12 }
  0x32   :  { %3385 = vmatmul.mubr.msk.bf16.gmra.mrb[20].mxu0 %vm256_vm0, %v3820_v13 }
  0x33   :  { %3388 = vmatprep.mubr.msk.bf16.mxu0 %vm256_vm0, %v3821_v14 }
  0x3a   :  { %3389 = vmatmul.mubr.msk.bf16.gmra.mrb[24].mxu0 %vm256_vm0, %v3822_v15 }
  0x3b   :  { %3392 = vmatprep.mubr.msk.bf16.mxu0 %vm256_vm0, %v3823_v16 }
  0x42   :  { %3393 = vmatmul.mubr.msk.bf16.gmra.mrb[28].mxu0 %vm256_vm0, %v3824_v17 }
  0x43   :  { %3396 = vmatprep.mubr.msk.bf16.mxu0 %vm256_vm0, %v3825_v18 }
  0x44   :  { %15 = vsyncpa [#allocation3], 0  ;;  %v3826_v19 = vld [vmem:[%s4709_s0 + $0x88] sm:$0xff]   ;;  %v3827_v20 = vld [vmem:[%s4709_s0 + $0x90] sm:$0xff]   ;;  %vm731_vm1 = vcmask 916480   ;;  %vm934_vm2 = vcmask 130048  }
  0x45   :  { %v3828_v21 = vld [vmem:[%s4709_s0 + $0x98] sm:$0xff]   ;;  %v3829_v22 = vld [vmem:[%s4709_s0 + $0xa0] sm:$0xff]   ;;  %v3830_v23 = vld [vmem:[%s4709_s0 + $0xa8] sm:$0xff]   ;;  %vm3919_vm3 = vmmov 0   ;;  %vm2685_vm6 = vcmask 1040384   ;;  %vm2841_vm7 = vcmask 523264  }
  0x46   :  { %v3831_v24 = vld [vmem:[%s4709_s0 + $0xb0] sm:$0xff]   ;;  %v3832_v25 = vld [vmem:[%s4709_s0 + $0xb8] sm:$0xff]   ;;  %v3833_v26 = vld [vmem:[%s4709_s0 + $0xc0] sm:$0xff]   ;;  %s3920_s11 = smov [#allocation2]  }
  0x47   :  { %v3834_v27 = vld [vmem:[%s4709_s0 + $0xc8] sm:$0xff]   ;;  %v3835_v28 = vld [vmem:[%s4709_s0 + $0xd0] sm:$0xff]   ;;  %v3836_v29 = vld [vmem:[%s4709_s0 + $0xd8] sm:$0xff]  }
  0x48   :  { %v3837_v30 = vld [vmem:[%s4712_s3] sm:$0xff]  }
  0x49   :  { %v3839_v31 = vld [vmem:[%s4712_s3 + $0x60] sm:$0xff]   ;;  %3434 = vmatprep.mubr.msk.bf16.mxu1 %vm731_vm1, %v3837_v30 }
  0x4a   :  { %3397 = vmatmul.mubr.msk.bf16.gmra.mrb[32].mxu0 %vm256_vm0, %v3826_v19  ;;  %v4109_v44 = vld [vmem:[%s4711_s2] ss:$0 sm:$0xff] }
  0x4b   :  { %3400 = vmatprep.mubr.msk.bf16.mxu0 %vm256_vm0, %v3827_v20 }
  0x52   :  { %3401 = vmatmul.mubr.msk.bf16.gmra.mrb[36].mxu0 %vm256_vm0, %v3828_v21 }
  0x53   :  { %3404 = vmatprep.mubr.msk.bf16.mxu0 %vm256_vm0, %v3829_v22 }
  0x5a   :  { %3405 = vmatmul.mubr.msk.bf16.gmra.mrb[40].mxu0 %vm256_vm0, %v3830_v23 }
  0x5b   :  { %3408 = vmatprep.mubr.msk.bf16.mxu0 %vm256_vm0, %v3831_v24 }
  0x62   :  { %3409 = vmatmul.mubr.msk.bf16.gmra.mrb[44].mxu0 %vm256_vm0, %v3832_v25 }
  0x63   :  { %3412 = vmatprep.mubr.msk.bf16.mxu0 %vm256_vm0, %v3833_v26 }
  0x6a   :  { %3413 = vmatmul.mubr.msk.bf16.gmra.mrb[48].mxu0 %vm256_vm0, %v3834_v27 }
  0x6b   :  { %3416 = vmatprep.mubr.msk.bf16.mxu0 %vm256_vm0, %v3835_v28 }
  0x72   :  { %3417 = vmatmul.mubr.msk.bf16.gmra.mrb[52].mxu0 %vm256_vm0, %v3836_v29 }
  0x73   :  { %3530 = vmatprep.mubr.msk.bf16.mxu0 %vm731_vm1, %v3839_v31 }
  0xdd   :  { %v3366_v32 = vpop.f32.mrb[0].mxu0 }
  0xde   :  { %v375_v33 = vpop.f32.mrb[1].mxu0  ;;  %v384_v60 = vadd.f32 %v3366_v32, %v4109_v44 }
  0xdf   :  { %v3367_v34 = vpop.f32.mrb[2].mxu0  ;;  %v376_v45 = vadd.f32 %v4109_v44, %v375_v33 }
  0xe0   :  { %v378_v35 = vpop.f32.mrb[3].mxu0  ;;  %v387_v1 = vadd.f32 %v3367_v34, %v4109_v44  ;;  %v600_v8 = vmax.f32 %v384_v60, 0.0 }
  0xe1   :  { %v379_v47 = vadd.f32 %v4109_v44, %v378_v35  ;;  %v598_v51 = vmax.f32 %v376_v45, 0.0 }
  0xe2   :  { %v601_v14 = vmax.f32 %v387_v1, 0.0 }
  0xe3   :  { %v599_v55 = vmax.f32 %v379_v47, 0.0 }
  0xe5   :  { %v3370_v36 = vpop.f32.mrb[4].mxu0 }
  0xe6   :  { %v391_v37 = vpop.f32.mrb[5].mxu0  ;;  %v400_v19 = vadd.f32 %v3370_v36, %v4109_v44 }
  0xe7   :  { %v3371_v38 = vpop.f32.mrb[6].mxu0  ;;  %v392_v58 = vadd.f32 %v4109_v44, %v391_v37 }
  0xe8   :  { %v394_v39 = vpop.f32.mrb[7].mxu0  ;;  %v403_v25 = vadd.f32 %v3371_v38, %v4109_v44  ;;  %v604_v32 = vmax.f32 %v400_v19, 0.0 }
  0xe9   :  { %v395_v62 = vadd.f32 %v4109_v44, %v394_v39  ;;  %v602_v4 = vmax.f32 %v392_v58, 0.0 }
  0xea   :  { %v605_v39 = vmax.f32 %v403_v25, 0.0 }
  0xeb   :  { %v603_v11 = vmax.f32 %v395_v62, 0.0 }
  0xed   :  { %v4102_v40 = vpop.f32.mrb[8].mxu0 }
  0xee   :  { %v407_v41 = vpop.f32.mrb[9].mxu0 }
  0xef   :  { %v4104_v42 = vpop.f32.mrb[10].mxu0  ;;  %v408_v17 = vadd.f32 %v4109_v44, %v407_v41 }
  0xf0   :  { %v410_v43 = vpop.f32.mrb[11].mxu0 }
  0xf1   :  { %v411_v22 = vadd.f32 %v4109_v44, %v410_v43  ;;  %v606_v28 = vmax.f32 %v408_v17, 0.0 }
  0xf3   :  { %v607_v35 = vmax.f32 %v411_v22, 0.0 }
  0xf5   :  { %v3378_v46 = vpop.f32.mrb[12].mxu0 }
  0xf6   :  { %v432_v48 = vadd.f32 %v3378_v46, %v4109_v44  ;;  %v423_v49 = vpop.f32.mrb[13].mxu0  ;;  %v416_v46 = vadd.f32 %v4102_v40, %v4109_v44 }
  0xf7   :  { %v3379_v50 = vpop.f32.mrb[14].mxu0  ;;  %v424_v43 = vadd.f32 %v4109_v44, %v423_v49 }
  0xf8   :  { %v612_v52 = vmax.f32 %v432_v48, 0.0  ;;  %v435_v53 = vadd.f32 %v3379_v50, %v4109_v44  ;;  %v426_v54 = vpop.f32.mrb[15].mxu0  ;;  %v608_v40 = vmax.f32 %v416_v46, 0.0 }
  0xf9   :  { %v427_v50 = vadd.f32 %v4109_v44, %v426_v54  ;;  %v610_v49 = vmax.f32 %v424_v43, 0.0 }
  0xfa   :  { %v4115_v56 = vmax.f32 %v598_v51, %v612_v52  ;;  %v613_v57 = vmax.f32 %v435_v53, 0.0  ;;  %v419_v53 = vadd.f32 %v4104_v42, %v4109_v44 }
  0xfc   :  { %v4118_v59 = vmax.f32 %v599_v55, %v613_v57 }
  0xfd   :  { %v3382_v61 = vpop.f32.mrb[16].mxu0 }
  0xfe   :  { %v448_v63 = vadd.f32 %v3382_v61, %v4109_v44  ;;  %v439_v0 = vpop.f32.mrb[17].mxu0 }
  0xff   :  { %v440_v2 = vadd.f32 %v4109_v44, %v439_v0  ;;  %v3383_v3 = vpop.f32.mrb[18].mxu0  ;;  %v611_v0 = vmax.f32 %v427_v50, 0.0 }
 0x100   :  { %v616_v5 = vmax.f32 %v448_v63, 0.0  ;;  %v451_v6 = vadd.f32 %v3383_v3, %v4109_v44  ;;  %v442_v7 = vpop.f32.mrb[19].mxu0 }
 0x101   :  { %v614_v9 = vmax.f32 %v440_v2, 0.0  ;;  %v443_v10 = vadd.f32 %v4109_v44, %v442_v7  ;;  %v609_v2 = vmax.f32 %v419_v53, 0.0 }
 0x102   :  { %v4127_v12 = vmax.f32 %v602_v4, %v616_v5  ;;  %v617_v13 = vmax.f32 %v451_v6, 0.0 }
 0x103   :  { %v4129_v15 = vmax.f32 %v600_v8, %v614_v9  ;;  %v615_v16 = vmax.f32 %v443_v10, 0.0 }
 0x104   :  { %v4132_v18 = vmax.f32 %v603_v11, %v617_v13 }
 0x105   :  { %v4135_v20 = vmax.f32 %v601_v14, %v615_v16  ;;  %v3386_v21 = vpop.f32.mrb[20].mxu0 }
 0x106   :  { %v464_v23 = vadd.f32 %v3386_v21, %v4109_v44  ;;  %v455_v24 = vpop.f32.mrb[21].mxu0 }
 0x107   :  { %v456_v26 = vadd.f32 %v4109_v44, %v455_v24  ;;  %v3387_v27 = vpop.f32.mrb[22].mxu0 }
 0x108   :  { %v620_v29 = vmax.f32 %v464_v23, 0.0  ;;  %v467_v30 = vadd.f32 %v3387_v27, %v4109_v44  ;;  %v458_v31 = vpop.f32.mrb[23].mxu0 }
 0x109   :  { %v618_v33 = vmax.f32 %v456_v26, 0.0  ;;  %v459_v34 = vadd.f32 %v4109_v44, %v458_v31 }
 0x10a   :  { %v4143_v36 = vmax.f32 %v606_v28, %v620_v29  ;;  %v621_v37 = vmax.f32 %v467_v30, 0.0 }
 0x10b   :  { %v4145_v41 = vmax.f32 %v604_v32, %v618_v33  ;;  %v619_v38 = vmax.f32 %v459_v34, 0.0 }
 0x10c   :  { %v4148_v45 = vmax.f32 %v607_v35, %v621_v37 }
 0x10d   :  { %v4152_v47 = vmax.f32 %v605_v39, %v619_v38  ;;  %v3390_v48 = vpop.f32.mrb[24].mxu0 }
 0x10e   :  { %v480_v51 = vadd.f32 %v3390_v48, %v4109_v44  ;;  %v471_v52 = vpop.f32.mrb[25].mxu0 }
 0x10f   :  { %v472_v55 = vadd.f32 %v4109_v44, %v471_v52  ;;  %v3391_v57 = vpop.f32.mrb[26].mxu0 }
 0x110   :  { %v624_v58 = vmax.f32 %v480_v51, 0.0  ;;  %v483_v60 = vadd.f32 %v3391_v57, %v4109_v44  ;;  %v474_v61 = vpop.f32.mrb[27].mxu0 }
 0x111   :  { %v622_v62 = vmax.f32 %v472_v55, 0.0  ;;  %v475_v63 = vadd.f32 %v4109_v44, %v474_v61 }
 0x112   :  { %v4161_v54 = vmax.f32 %v610_v49, %v624_v58  ;;  %v625_v1 = vmax.f32 %v483_v60, 0.0 }
 0x113   :  { %v4163_v3 = vmax.f32 %v608_v40, %v622_v62  ;;  %v623_v42 = vmax.f32 %v475_v63, 0.0 }
 0x114   :  { %v4165_v4 = vmax.f32 %v611_v0, %v625_v1 }
 0x115   :  { %v4167_v5 = vmax.f32 %v609_v2, %v623_v42  ;;  %v3394_v6 = vpop.f32.mrb[28].mxu0 }
 0x116   :  { %v487_v7 = vpop.f32.mrb[29].mxu0  ;;  %v496_v38 = vadd.f32 %v3394_v6, %v4109_v44 }
 0x117   :  { %v3395_v8 = vpop.f32.mrb[30].mxu0  ;;  %v488_v22 = vadd.f32 %v4109_v44, %v487_v7 }
 0x118   :  { %v490_v9 = vpop.f32.mrb[31].mxu0  ;;  %v499_v52 = vadd.f32 %v3395_v8, %v4109_v44  ;;  %v628_v61 = vmax.f32 %v496_v38, 0.0 }
 0x119   :  { %v491_v24 = vadd.f32 %v4109_v44, %v490_v9  ;;  %v626_v28 = vmax.f32 %v488_v22, 0.0 }
 0x11a   :  { %v629_v1 = vmax.f32 %v499_v52, 0.0 }
 0x11b   :  { %v627_v32 = vmax.f32 %v491_v24, 0.0 }
 0x11d   :  { %v3398_v10 = vpop.f32.mrb[32].mxu0 }
 0x11e   :  { %v503_v11 = vpop.f32.mrb[33].mxu0  ;;  %v512_v9 = vadd.f32 %v3398_v10, %v4109_v44 }
 0x11f   :  { %v3399_v13 = vpop.f32.mrb[34].mxu0  ;;  %v504_v35 = vadd.f32 %v4109_v44, %v503_v11 }
 0x120   :  { %v506_v14 = vpop.f32.mrb[35].mxu0 }
 0x121   :  { %v507_v46 = vadd.f32 %v4109_v44, %v506_v14  ;;  %v630_v57 = vmax.f32 %v504_v35, 0.0 }
 0x125   :  { %v4169_v16 = vpop.f32.mrb[36].mxu0 }
 0x126   :  { %v519_v17 = vpop.f32.mrb[37].mxu0 }
 0x127   :  { %v4171_v19 = vpop.f32.mrb[38].mxu0  ;;  %v520_v6 = vadd.f32 %v4109_v44, %v519_v17 }
 0x128   :  { %v522_v21 = vpop.f32.mrb[39].mxu0 }
 0x12d   :  { %v3406_v23 = vpop.f32.mrb[40].mxu0 }
 0x12e   :  { %v544_v25 = vadd.f32 %v3406_v23, %v4109_v44  ;;  %v4176_v26 = vpop.f32.mrb[41].mxu0  ;;  %v523_v23 = vadd.f32 %v4109_v44, %v522_v21  ;;  %v632_v21 = vmax.f32 %v512_v9, 0.0 }
 0x12f   :  { %v3407_v27 = vpop.f32.mrb[42].mxu0 }
 0x130   :  { %v640_v29 = vmax.f32 %v544_v25, 0.0  ;;  %v547_v30 = vadd.f32 %v3407_v27, %v4109_v44  ;;  %v4179_v31 = vpop.f32.mrb[43].mxu0 }
 0x132   :  { %v668_v33 = vmax.f32 %v626_v28, %v640_v29  ;;  %v641_v34 = vmax.f32 %v547_v30, 0.0  ;;  %v515_v28 = vadd.f32 %v3399_v13, %v4109_v44  ;;  %v634_v30 = vmax.f32 %v520_v6, 0.0 }
 0x134   :  { %v682_v37 = vmax.f32 %v4115_v56, %v668_v33  ;;  %v669_v39 = vmax.f32 %v627_v32, %v641_v34 }
 0x135   :  { %v3410_v43 = vpop.f32.mrb[44].mxu0 }
 0x136   :  { %v683_v48 = vmax.f32 %v4118_v59, %v669_v39  ;;  %v560_v50 = vadd.f32 %v3410_v43, %v4109_v44  ;;  %v551_v51 = vpop.f32.mrb[45].mxu0  ;;  %v631_v59 = vmax.f32 %v507_v46, 0.0  ;;  %v536_v46 = vadd.f32 %v4109_v44, %v4176_v26 }
 0x137   :  { %v552_v53 = vadd.f32 %v4109_v44, %v551_v51  ;;  %v3411_v55 = vpop.f32.mrb[46].mxu0  ;;  %v528_v51 = vadd.f32 %v4169_v16, %v4109_v44  ;;  %v539_v26 = vadd.f32 %v4109_v44, %v4179_v31 }
 0x138   :  { %v4189_v49 = vpack.c.bf16 %v683_v48, %v682_v37  ;;  %v644_v56 = vmax.f32 %v560_v50, 0.0  ;;  %v563_v58 = vadd.f32 %v3411_v55, %v4109_v44  ;;  %v554_v60 = vpop.f32.mrb[47].mxu0  ;;  %v635_v37 = vmax.f32 %v523_v23, 0.0 }
 0x139   :  { %v642_v40 = vmax.f32 %v552_v53, 0.0  ;;  %v555_v62 = vadd.f32 %v4109_v44, %v554_v60 }
 0x13a   :  { %v672_v63 = vmax.f32 %v630_v57, %v644_v56  ;;  %v645_v0 = vmax.f32 %v563_v58, 0.0  ;;  %3420 = vmatprep.subr.bf16.mxu1 %v4189_v49  ;;  %3516 = vmatprep.subr.bf16.mxu0 %v4189_v49  ;;  %v531_v58 = vadd.f32 %v4171_v19, %v4109_v44 }
 0x13b   :  { %v670_v2 = vmax.f32 %v628_v61, %v642_v40  ;;  %v643_v42 = vmax.f32 %v555_v62, 0.0  ;;  %3421 = vmatpush3.bf16.msra.mxu1 %v4189_v49  ;;  %3517 = vmatpush3.bf16.msra.mxu0 %v4189_v49  ;;  %v638_v61 = vmax.f32 %v536_v46, 0.0  ;;  %v3866_v46 = vld [vmem:[%s4712_s3 + $0xd8] sm:$0xff]  }
 0x13c   :  { %v686_v7 = vmax.f32 %v4127_v12, %v672_v63  ;;  %v673_v8 = vmax.f32 %v631_v59, %v645_v0  ;;  %v639_v0 = vmax.f32 %v539_v26, 0.0 }
 0x13d   :  { %v684_v11 = vmax.f32 %v4129_v15, %v670_v2  ;;  %v671_v14 = vmax.f32 %v629_v1, %v643_v42  ;;  %v3414_v22 = vpop.f32.mrb[48].mxu0  ;;  %v637_v42 = vmax.f32 %v531_v58, 0.0 }
 0x13e   :  { %v687_v24 = vmax.f32 %v4132_v18, %v673_v8  ;;  %v576_v25 = vadd.f32 %v3414_v22, %v4109_v44  ;;  %v567_v27 = vpop.f32.mrb[49].mxu0 }
 0x13f   :  { %v685_v17 = vmax.f32 %v4135_v20, %v671_v14  ;;  %v568_v12 = vadd.f32 %v4109_v44, %v567_v27  ;;  %v3415_v29 = vpop.f32.mrb[50].mxu0  ;;  %v633_v20 = vmax.f32 %v515_v28, 0.0  ;;  %v3844_v27 = vld [vmem:[%s4712_s3 + $0x78] sm:$0xff]   ;;  %v3845_v28 = vld [vmem:[%s4712_s3 + $0x20] sm:$0xff]  }
 0x140   :  { %v4207_v10 = vpack.c.bf16 %v687_v24, %v686_v7  ;;  %v648_v15 = vmax.f32 %v576_v25, 0.0  ;;  %v579_v32 = vadd.f32 %v3415_v29, %v4109_v44  ;;  %v570_v33 = vpop.f32.mrb[51].mxu0  ;;  %v3843_v24 = vld [vmem:[%s4712_s3 + $0x70] sm:$0xff]   ;;  %v3842_v25 = vld [vmem:[%s4712_s3 + $0x18] sm:$0xff]   ;;  %v3848_v29 = vld [vmem:[%s4712_s3 + $0x88] sm:$0xff]  }
 0x141   :  { %v4210_v34 = vpack.c.bf16 %v685_v17, %v684_v11  ;;  %v646_v18 = vmax.f32 %v568_v12, 0.0  ;;  %v571_v35 = vadd.f32 %v4109_v44, %v570_v33  ;;  %v3847_v17 = vld [vmem:[%s4712_s3 + $0x80] sm:$0xff]   ;;  %v3846_v12 = vld [vmem:[%s4712_s3 + $0x28] sm:$0xff]   ;;  %v3852_v33 = vld [vmem:[%s4712_s3 + $0x98] sm:$0xff]  }
 0x142   :  { %v676_v13 = vmax.f32 %v634_v30, %v648_v15  ;;  %v649_v39 = vmax.f32 %v579_v32, 0.0  ;;  %v3849_v30 = vld [vmem:[%s4712_s3 + $0x30] sm:$0xff]   ;;  %v3850_v32 = vld [vmem:[%s4712_s3 + $0x38] sm:$0xff]  }
 0x143   :  { %v674_v38 = vmax.f32 %v632_v21, %v646_v18  ;;  %v647_v43 = vmax.f32 %v571_v35, 0.0  ;;  %3422 = vmatprep.subr.bf16.mxu1 %v4210_v34  ;;  %3518 = vmatprep.subr.bf16.mxu0 %v4210_v34  ;;  %v3851_v15 = vld [vmem:[%s4712_s3 + $0x90] sm:$0xff]   ;;  %v3853_v21 = vld [vmem:[%s4712_s3 + $0xa0] sm:$0xff]   ;;  %v3854_v18 = vld [vmem:[%s4712_s3 + $0xa8] sm:$0xff]  }
 0x144   :  { %v690_v48 = vmax.f32 %v4143_v36, %v676_v13  ;;  %v677_v50 = vmax.f32 %v635_v37, %v649_v39  ;;  %3423 = vmatpush3.bf16.msra.mxu1 %v4210_v34  ;;  %3519 = vmatpush3.bf16.msra.mxu0 %v4210_v34  ;;  %v3855_v35 = vld [vmem:[%s4712_s3 + $0xb0] sm:$0xff]   ;;  %v3856_v37 = vld [vmem:[%s4712_s3 + $0xb8] sm:$0xff]   ;;  %v3857_v13 = vld [vmem:[%s4712_s3 + $0xc0] sm:$0xff]  }
 0x145   :  { %v688_v52 = vmax.f32 %v4145_v41, %v674_v38  ;;  %v675_v53 = vmax.f32 %v633_v20, %v647_v43  ;;  %v3418_v55 = vpop.f32.mrb[52].mxu0  ;;  %3424 = vmatprep.subr.bf16.mxu1 %v4207_v10  ;;  %3520 = vmatprep.subr.bf16.mxu0 %v4207_v10  ;;  %v3858_v39 = vld [vmem:[%s4712_s3 + $0xc8] sm:$0xff]   ;;  %v3860_v38 = vld [vmem:[%s4713_s4] sm:$0xff]   ;;  %v3865_v43 = vld [vmem:[%s4712_s3 + $0xd0] sm:$0xff]  }
 0x146   :  { %v691_v36 = vmax.f32 %v4148_v45, %v677_v50  ;;  %v592_v57 = vadd.f32 %v3418_v55, %v4109_v44  ;;  %v583_v56 = vpop.f32.mrb[53].mxu0  ;;  %v636_v45 = vmax.f32 %v528_v51, 0.0  ;;  %v3859_v20 = vld [vmem:[%s4713_s4 + $0x8] sm:$0xff]  }
 0x147   :  { %v689_v16 = vmax.f32 %v4152_v47, %v675_v53  ;;  %v584_v41 = vadd.f32 %v4109_v44, %v583_v56  ;;  %v3419_v60 = vpop.f32.mrb[54].mxu0 }
 0x148   :  { %v4233_v40 = vpack.c.bf16 %v691_v36, %v690_v48  ;;  %v652_v62 = vmax.f32 %v592_v57, 0.0  ;;  %v595_v59 = vadd.f32 %v3419_v60, %v4109_v44  ;;  %v586_v31 = vpop.f32.mrb[55].mxu0  ;;  %3425 = vmatpush3.bf16.msra.mxu1 %v4207_v10  ;;  %3521 = vmatpush3.bf16.msra.mxu0 %v4207_v10 }
 0x149   :  { %v4238_v63 = vpack.c.bf16 %v689_v16, %v688_v52  ;;  %v650_v19 = vmax.f32 %v584_v41, 0.0  ;;  %v587_v47 = vadd.f32 %v4109_v44, %v586_v31 }
 0x14a   :  { %v680_v1 = vmax.f32 %v638_v61, %v652_v62  ;;  %v653_v2 = vmax.f32 %v595_v59, 0.0 }
 0x14b   :  { %v678_v6 = vmax.f32 %v636_v45, %v650_v19  ;;  %v651_v7 = vmax.f32 %v587_v47, 0.0  ;;  %3426 = vmatprep.subr.bf16.mxu1 %v4238_v63  ;;  %3522 = vmatprep.subr.bf16.mxu0 %v4238_v63 }
 0x14c   :  { %v694_v8 = vmax.f32 %v4161_v54, %v680_v1  ;;  %v681_v9 = vmax.f32 %v639_v0, %v653_v2  ;;  %3427 = vmatpush3.bf16.msra.mxu1 %v4238_v63  ;;  %3523 = vmatpush3.bf16.msra.mxu0 %v4238_v63 }
 0x14d   :  { %v692_v11 = vmax.f32 %v4163_v3, %v678_v6  ;;  %v679_v44 = vmax.f32 %v637_v42, %v651_v7  ;;  %3428 = vmatprep.subr.bf16.mxu1 %v4233_v40  ;;  %3524 = vmatprep.subr.bf16.mxu0 %v4233_v40  ;;  %v3838_v3 = vld [vmem:[%s4712_s3 + $0x8] sm:$0xff]  }
 0x14e   :  { %v695_v14 = vmax.f32 %v4165_v4, %v681_v9  ;;  %v3840_v4 = vld [vmem:[%s4712_s3 + $0x68] sm:$0xff]  }
 0x14f   :  { %v693_v22 = vmax.f32 %v4167_v5, %v679_v44  ;;  %v3841_v5 = vld [vmem:[%s4712_s3 + $0x10] sm:$0xff]  }
 0x150   :  { %v4251_v23 = vpack.c.bf16 %v695_v14, %v694_v8  ;;  %3429 = vmatpush3.bf16.msra.mxu1 %v4233_v40  ;;  %3525 = vmatpush3.bf16.msra.mxu0 %v4233_v40 }
 0x151   :  { %v4255_v54 = vpack.c.bf16 %v693_v22, %v692_v11  ;;  %v3861_v22 = vld [vmem:[%s4712_s3 + $0x40] sm:$0xff]  }
 0x153   :  { %3430 = vmatprep.subr.bf16.mxu1 %v4255_v54  ;;  %3526 = vmatprep.subr.bf16.mxu0 %v4255_v54 }
 0x154   :  { %3431 = vmatpush3.bf16.msra.mxu1 %v4255_v54  ;;  %3527 = vmatpush3.bf16.msra.mxu0 %v4255_v54 }
 0x155   :  { %3432 = vmatprep.subr.bf16.mxu1 %v4251_v23  ;;  %3528 = vmatprep.subr.bf16.mxu0 %v4251_v23 }
 0x158   :  { %3433 = vmatpush3.bf16.msra.mxu1 %v4251_v23  ;;  %3529 = vmatpush3.bf16.msra.mxu0 %v4251_v23 }
 0x159   :  { %3442 = vmatprep.subr.bf16.mxu1 %v4189_v49  ;;  %3548 = vmatprep.subr.bf16.mxu0 %v4189_v49 }
 0x15b   :  { %3435 = vmatmul.mubr.msk.bf16.vlgmr.msra.gmra.mrb[0].mxu1 %vm731_vm1, %v3838_v3  ;;  %3531 = vmatmul.mubr.msk.bf16.vlgmr.msra.gmra.mrb[56].mxu0 %vm731_vm1, %v3840_v4  ;;  %v3867_v3 = vld [vmem:[%s4713_s4 + $0x10] sm:$0xff]   ;;  %v3862_v4 = vld [vmem:[%s4712_s3 + $0x48] sm:$0xff]  }
 0x15c   :  { %3443 = vmatpush3.bf16.msra.mxu1 %v4189_v49  ;;  %3549 = vmatpush3.bf16.msra.mxu0 %v4189_v49 }
 0x15d   :  { %3444 = vmatprep.subr.bf16.mxu1 %v4210_v34  ;;  %3550 = vmatprep.subr.bf16.mxu0 %v4210_v34 }
 0x15e   :  { %3438 = vmatprep.mubr.msk.bf16.mxu1 %vm731_vm1, %v3841_v5  ;;  %3534 = vmatprep.mubr.msk.bf16.mxu0 %vm731_vm1, %v3843_v24  ;;  %v3863_v5 = vld [vmem:[%s4712_s3 + $0x50] sm:$0xff]   ;;  %v3864_v24 = vld [vmem:[%s4712_s3 + $0x58] sm:$0xff]  }
 0x160   :  { %3445 = vmatpush3.bf16.msra.mxu1 %v4210_v34  ;;  %3551 = vmatpush3.bf16.msra.mxu0 %v4210_v34 }
 0x161   :  { %3446 = vmatprep.subr.bf16.mxu1 %v4207_v10  ;;  %3552 = vmatprep.subr.bf16.mxu0 %v4207_v10 }
 0x163   :  { %3439 = vmatmul.mubr.msk.bf16.gmra.mrb[4].mxu1 %vm731_vm1, %v3842_v25  ;;  %3535 = vmatmul.mubr.msk.bf16.gmra.mrb[60].mxu0 %vm731_vm1, %v3844_v27 }
 0x164   :  { %3447 = vmatpush3.bf16.msra.mxu1 %v4207_v10  ;;  %3553 = vmatpush3.bf16.msra.mxu0 %v4207_v10 }
 0x165   :  { %3448 = vmatprep.subr.bf16.mxu1 %v4238_v63  ;;  %3554 = vmatprep.subr.bf16.mxu0 %v4238_v63 }
 0x166   :  { %3456 = vmatprep.mubr.msk.bf16.mxu1 %vm731_vm1, %v3845_v28  ;;  %3562 = vmatprep.mubr.msk.bf16.mxu0 %vm731_vm1, %v3847_v17 }
 0x168   :  { %3449 = vmatpush3.bf16.msra.mxu1 %v4238_v63  ;;  %3555 = vmatpush3.bf16.msra.mxu0 %v4238_v63 }
 0x169   :  { %3450 = vmatprep.subr.bf16.mxu1 %v4233_v40  ;;  %3556 = vmatprep.subr.bf16.mxu0 %v4233_v40 }
 0x16c   :  { %3451 = vmatpush3.bf16.msra.mxu1 %v4233_v40  ;;  %3557 = vmatpush3.bf16.msra.mxu0 %v4233_v40 }
 0x16d   :  { %3452 = vmatprep.subr.bf16.mxu1 %v4255_v54  ;;  %3558 = vmatprep.subr.bf16.mxu0 %v4255_v54 }
 0x170   :  { %3453 = vmatpush3.bf16.msra.mxu1 %v4255_v54  ;;  %3559 = vmatpush3.bf16.msra.mxu0 %v4255_v54 }
 0x171   :  { %3454 = vmatprep.subr.bf16.mxu1 %v4251_v23  ;;  %3560 = vmatprep.subr.bf16.mxu0 %v4251_v23 }
 0x174   :  { %3455 = vmatpush3.bf16.msra.mxu1 %v4251_v23  ;;  %3561 = vmatpush3.bf16.msra.mxu0 %v4251_v23 }
 0x175   :  { %3580 = vmatprep.subr.bf16.mxu0 %v4189_v49  ;;  %3464 = vmatprep.subr.bf16.mxu1 %v3859_v20 }
 0x177   :  { %3457 = vmatmul.mubr.msk.bf16.vlgmr.msra.gmra.mrb[8].mxu1 %vm731_vm1, %v3846_v12  ;;  %3563 = vmatmul.mubr.msk.bf16.vlgmr.msra.gmra.mrb[64].mxu0 %vm731_vm1, %v3848_v29  ;;  %v3868_v12 = vld [vmem:[%s4713_s4 + $0x18] sm:$0xff]  }
 0x178   :  { %3581 = vmatpush3.bf16.msra.mxu0 %v4189_v49  ;;  %3460 = vmatprep.mubr.msk.bf16.mxu1 %vm731_vm1, %v3849_v30 }
 0x179   :  { %3582 = vmatprep.subr.bf16.mxu0 %v4210_v34  ;;  %3566 = vmatprep.mubr.msk.bf16.mxu0 %vm731_vm1, %v3851_v15 }
 0x17a   :  { %3465 = vmatpush3.bf16.msra.mxu1 %v3859_v20 }
 0x17b   :  { %3474 = vmatprep.subr.bf16.mxu1 %v3860_v38 }
 0x17c   :  { %3583 = vmatpush3.bf16.msra.mxu0 %v4210_v34 }
 0x17d   :  { %3584 = vmatprep.subr.bf16.mxu0 %v4207_v10 }
 0x17f   :  { %3461 = vmatmul.mubr.msk.bf16.gmra.mrb[12].mxu1 %vm731_vm1, %v3850_v32  ;;  %3567 = vmatmul.mubr.msk.bf16.gmra.mrb[68].mxu0 %vm731_vm1, %v3852_v33 }
 0x180   :  { %3585 = vmatpush3.bf16.msra.mxu0 %v4207_v10  ;;  %3594 = vmatprep.mubr.msk.bf16.mxu0 %vm731_vm1, %v3853_v21 }
 0x181   :  { %3586 = vmatprep.subr.bf16.mxu0 %v4238_v63 }
 0x184   :  { %3587 = vmatpush3.bf16.msra.mxu0 %v4238_v63 }
 0x185   :  { %3588 = vmatprep.subr.bf16.mxu0 %v4233_v40 }
 0x188   :  { %3589 = vmatpush3.bf16.msra.mxu0 %v4233_v40 }
 0x189   :  { %3590 = vmatprep.subr.bf16.mxu0 %v4255_v54 }
 0x18c   :  { %3591 = vmatpush3.bf16.msra.mxu0 %v4255_v54 }
 0x18d   :  { %3592 = vmatprep.subr.bf16.mxu0 %v4251_v23 }
 0x190   :  { %3593 = vmatpush3.bf16.msra.mxu0 %v4251_v23 }
 0x191   :  { %3612 = vmatprep.subr.bf16.mxu0 %v4189_v49 }
 0x193   :  { %3595 = vmatmul.mubr.msk.bf16.vlgmr.msra.gmra.mrb[72].mxu0 %vm731_vm1, %v3854_v18 }
 0x194   :  { %3613 = vmatpush3.bf16.msra.mxu0 %v4189_v49  ;;  %3598 = vmatprep.mubr.msk.bf16.mxu0 %vm731_vm1, %v3855_v35 }
 0x195   :  { %3614 = vmatprep.subr.bf16.mxu0 %v4210_v34 }
 0x198   :  { %3615 = vmatpush3.bf16.msra.mxu0 %v4210_v34 }
 0x199   :  { %3616 = vmatprep.subr.bf16.mxu0 %v4207_v10 }
 0x19b   :  { %3599 = vmatmul.mubr.msk.bf16.gmra.mrb[76].mxu0 %vm731_vm1, %v3856_v37 }
 0x19c   :  { %3617 = vmatpush3.bf16.msra.mxu0 %v4207_v10  ;;  %3626 = vmatprep.mubr.msk.bf16.mxu0 %vm731_vm1, %v3857_v13 }
 0x19d   :  { %3618 = vmatprep.subr.bf16.mxu0 %v4238_v63 }
 0x1a0   :  { %3619 = vmatpush3.bf16.msra.mxu0 %v4238_v63 }
 0x1a1   :  { %3620 = vmatprep.subr.bf16.mxu0 %v4233_v40 }
 0x1a4   :  { %3621 = vmatpush3.bf16.msra.mxu0 %v4233_v40 }
 0x1a5   :  { %3622 = vmatprep.subr.bf16.mxu0 %v4255_v54 }
 0x1a8   :  { %3623 = vmatpush3.bf16.msra.mxu0 %v4255_v54 }
 0x1a9   :  { %3624 = vmatprep.subr.bf16.mxu0 %v4251_v23 }
 0x1ac   :  { %3625 = vmatpush3.bf16.msra.mxu0 %v4251_v23 }
 0x1ad   :  { %3676 = vmatprep.subr.bf16.mxu0 %v4189_v49 }
 0x1af   :  { %3627 = vmatmul.mubr.msk.bf16.vlgmr.msra.gmra.mrb[80].mxu0 %vm731_vm1, %v3858_v39 }
 0x1b0   :  { %3677 = vmatpush3.bf16.msra.mxu0 %v4189_v49  ;;  %3630 = vmatprep.mubr.msk.bf16.mxu0 %vm731_vm1, %v3865_v43 }
 0x1b1   :  { %3678 = vmatprep.subr.bf16.mxu0 %v4210_v34 }
 0x1b4   :  { %3679 = vmatpush3.bf16.msra.mxu0 %v4210_v34 }
 0x1b5   :  { %3680 = vmatprep.subr.bf16.mxu0 %v4207_v10 }
 0x1b7   :  { %3631 = vmatmul.mubr.msk.bf16.gmra.mrb[84].mxu0 %vm731_vm1, %v3866_v46 }
 0x1b8   :  { %3681 = vmatpush3.bf16.msra.mxu0 %v4207_v10 }
 0x1b9   :  { %3682 = vmatprep.subr.bf16.mxu0 %v4238_v63 }
 0x1bc   :  { %3683 = vmatpush3.bf16.msra.mxu0 %v4238_v63 }
 0x1bd   :  { %3684 = vmatprep.subr.bf16.mxu0 %v4233_v40 }
 0x1c0   :  { %3685 = vmatpush3.bf16.msra.mxu0 %v4233_v40 }
 0x1c1   :  { %3686 = vmatprep.subr.bf16.mxu0 %v4255_v54 }
 0x1c4   :  { %3687 = vmatpush3.bf16.msra.mxu0 %v4255_v54 }
 0x1c5   :  { %3688 = vmatprep.subr.bf16.mxu0 %v4251_v23 }
 0x1c8   :  { %3689 = vmatpush3.bf16.msra.mxu0 %v4251_v23 }
 0x22e   :  { %v3436_v48 = vpop.f32.mrb[0].mxu1  ;;  %v4429_v50 = vpop.f32.mrb[56].mxu0 }
 0x22f   :  { %v778_v51 = vpop.f32.mrb[1].mxu1  ;;  %v4431_v52 = vpop.f32.mrb[57].mxu0 }
 0x230   :  { %v3437_v53 = vpop.f32.mrb[2].mxu1  ;;  %v4433_v55 = vpop.f32.mrb[58].mxu0 }
 0x231   :  { %v810_v26 = vpack.c.bf16 %v3437_v53, %v3436_v48  ;;  %v781_v36 = vpop.f32.mrb[3].mxu1  ;;  %v1406_v57 = vpack.c.bf16 %v4433_v55, %v4429_v50  ;;  %v4437_v56 = vpop.f32.mrb[59].mxu0  ;;  %v3871_v50 = vld [vmem:[%s4713_s4 + $0x30] sm:$0xff]  }
 0x232   :  { %v809_v58 = vpack.c.bf16 %v781_v36, %v778_v51  ;;  %v1405_v16 = vpack.c.bf16 %v4437_v56, %v4431_v52  ;;  %v3872_v52 = vld [vmem:[%s4712_s3 + $0xe0] sm:$0xff]  }
 0x236   :  { %v3440_v41 = vpop.f32.mrb[4].mxu1  ;;  %v4441_v60 = vpop.f32.mrb[60].mxu0 }
 0x237   :  { %v794_v61 = vpop.f32.mrb[5].mxu1  ;;  %v4443_v62 = vpop.f32.mrb[61].mxu0 }
 0x238   :  { %v3441_v59 = vpop.f32.mrb[6].mxu1  ;;  %v4486_v25 = vpop.f32.mrb[62].mxu0 }
 0x239   :  { %v812_v31 = vpack.c.bf16 %v3441_v59, %v3440_v41  ;;  %v797_v45 = vpop.f32.mrb[7].mxu1  ;;  %v1408_v27 = vpack.c.bf16 %v4486_v25, %v4441_v60  ;;  %v4490_v28 = vpop.f32.mrb[63].mxu0 }
 0x23a   :  { %v811_v19 = vpack.c.bf16 %v797_v45, %v794_v61  ;;  %v1407_v17 = vpack.c.bf16 %v4490_v28, %v4443_v62 }
 0x24a   :  { %v3458_v47 = vpop.f32.mrb[8].mxu1  ;;  %v4497_v29 = vpop.f32.mrb[64].mxu0 }
 0x24b   :  { %v890_v0 = vpop.f32.mrb[9].mxu1  ;;  %v4499_v30 = vpop.f32.mrb[65].mxu0 }
 0x24c   :  { %v3459_v1 = vpop.f32.mrb[10].mxu1  ;;  %v4501_v15 = vpop.f32.mrb[66].mxu0 }
 0x24d   :  { %v922_v2 = vpack.c.bf16 %v3459_v1, %v3458_v47  ;;  %v893_v42 = vpop.f32.mrb[11].mxu1  ;;  %v1610_v32 = vpack.c.bf16 %v4501_v15, %v4497_v29  ;;  %v4505_v33 = vpop.f32.mrb[67].mxu0 }
 0x24e   :  { %v921_v6 = vpack.c.bf16 %v893_v42, %v890_v0  ;;  %v1609_v21 = vpack.c.bf16 %v4505_v33, %v4499_v30 }
 0x250   :  { %3466 = vmatprep.mubr.msk.bf16.mxu1 %vm934_vm2, %v921_v6 }
 0x251   :  { %3467 = vmatmul.mubr.msk.bf16.vlgmr.msra.gmra.mrb[16].mxu1 %vm934_vm2, %v922_v2 }
 0x252   :  { %3475 = vmatpush3.bf16.msra.mxu1 %v3860_v38  ;;  %v3462_v7 = vpop.f32.mrb[12].mxu1  ;;  %v4509_v18 = vpop.f32.mrb[68].mxu0 }
 0x253   :  { %3484 = vmatprep.subr.bf16.mxu1 %v4189_v49  ;;  %v906_v8 = vpop.f32.mrb[13].mxu1  ;;  %v4511_v35 = vpop.f32.mrb[69].mxu0 }
 0x254   :  { %v3463_v9 = vpop.f32.mrb[14].mxu1  ;;  %v4513_v37 = vpop.f32.mrb[70].mxu0 }
 0x255   :  { %v924_v11 = vpack.c.bf16 %v3463_v9, %v3462_v7  ;;  %v909_v44 = vpop.f32.mrb[15].mxu1  ;;  %v1612_v13 = vpack.c.bf16 %v4513_v37, %v4509_v18  ;;  %v4517_v39 = vpop.f32.mrb[71].mxu0 }
 0x256   :  { %v923_v14 = vpack.c.bf16 %v909_v44, %v906_v8  ;;  %v1611_v20 = vpack.c.bf16 %v4517_v39, %v4511_v35  ;;  %v3877_v44 = vld [vmem:[%s4712_s3 + $0x108] sm:$0xff]  }
 0x258   :  { %3470 = vmatprep.mubr.msk.bf16.mxu1 %vm934_vm2, %v923_v14  ;;  %v3878_v14 = vld [vmem:[%s4712_s3 + $0x110] sm:$0xff]  }
 0x259   :  { %3471 = vmatmul.mubr.msk.bf16.gmra.mrb[20].mxu1 %vm934_vm2, %v924_v11  ;;  %v3876_v11 = vld [vmem:[%s4712_s3 + $0x100] sm:$0xff]  }
 0x25a   :  { %3476 = vmatprep.mubr.msk.bf16.mxu1 %vm934_vm2, %v809_v58  ;;  %3690 = vmatprep.mubr.msk.bf16.mxu0 %vm731_vm1, %v3876_v11 }
 0x25b   :  { %3691 = vmatmul.mubr.msk.bf16.vlgmr.msra.gmra.mrb[88].mxu0 %vm731_vm1, %v3877_v44 }
 0x25c   :  { %3694 = vmatprep.mubr.msk.bf16.mxu0 %vm731_vm1, %v3878_v14 }
 0x261   :  { %3477 = vmatmul.mubr.msk.bf16.vlgmr.msra.gmra.mrb[16].mxu1 %vm934_vm2, %v810_v26 }
 0x262   :  { %3485 = vmatpush3.bf16.msra.mxu1 %v4189_v49  ;;  %3480 = vmatprep.mubr.msk.bf16.mxu1 %vm934_vm2, %v811_v19 }
 0x263   :  { %3486 = vmatprep.subr.bf16.mxu1 %v4210_v34 }
 0x266   :  { %3487 = vmatpush3.bf16.msra.mxu1 %v4210_v34  ;;  %v4521_v38 = vpop.f32.mrb[72].mxu0 }
 0x267   :  { %3488 = vmatprep.subr.bf16.mxu1 %v4207_v10  ;;  %v4523_v43 = vpop.f32.mrb[73].mxu0 }
 0x268   :  { %v4525_v46 = vpop.f32.mrb[74].mxu0 }
 0x269   :  { %3481 = vmatmul.mubr.msk.bf16.gmra.mrb[20].mxu1 %vm934_vm2, %v812_v31  ;;  %v1814_v48 = vpack.c.bf16 %v4525_v46, %v4521_v38  ;;  %v1785_v51 = vpop.f32.mrb[75].mxu0  ;;  %v3882_v38 = vld [vmem:[%s4715_s6] sm:$0xff]   ;;  %v3918_v46 = vmov 0.0  }
 0x26a   :  { %3489 = vmatpush3.bf16.msra.mxu1 %v4207_v10  ;;  %3498 = vmatprep.mubr.msk.bf16.mxu1 %vm731_vm1, %v3861_v22  ;;  %v1813_v53 = vpack.c.bf16 %v1785_v51, %v4523_v43  ;;  %v3879_v22 = vld [vmem:[%s4712_s3 + $0x118] sm:$0xff]  }
 0x26b   :  { %3490 = vmatprep.subr.bf16.mxu1 %v4238_v63  ;;  %3695 = vmatmul.mubr.msk.bf16.gmra.mrb[92].mxu0 %vm731_vm1, %v3879_v22 }
 0x26c   :  { %3708 = vmatprep.subr.bf16.mxu0 %v3918_v46  ;;  %3724 = vmatprep.mubr.msk.bf16.mxu0 %vm3919_vm3, %v3918_v46 }
 0x26d   :  { %3709 = vmatpush3.bf16.msra.mxu0 %v3882_v38 }
 0x26e   :  { %3491 = vmatpush3.bf16.msra.mxu1 %v4238_v63  ;;  %v4530_v26 = vpop.f32.mrb[76].mxu0  ;;  %3710 = vmatprep.subr.bf16.mxu0 %v3918_v46 }
 0x26f   :  { %3492 = vmatprep.subr.bf16.mxu1 %v4233_v40  ;;  %v1798_v36 = vpop.f32.mrb[77].mxu0 }
 0x270   :  { %v4532_v58 = vpop.f32.mrb[78].mxu0 }
 0x271   :  { %v1816_v41 = vpack.c.bf16 %v4532_v58, %v4530_v26  ;;  %v1801_v61 = vpop.f32.mrb[79].mxu0  ;;  %v3869_v26 = vld [vmem:[%s4713_s4 + $0x20] sm:$0xff]  }
 0x272   :  { %3493 = vmatpush3.bf16.msra.mxu1 %v4233_v40  ;;  %v1815_v59 = vpack.c.bf16 %v1801_v61, %v1798_v36 }
 0x273   :  { %3494 = vmatprep.subr.bf16.mxu1 %v4255_v54 }
 0x276   :  { %3495 = vmatpush3.bf16.msra.mxu1 %v4255_v54 }
 0x277   :  { %3496 = vmatprep.subr.bf16.mxu1 %v4251_v23 }
 0x27a   :  { %3497 = vmatpush3.bf16.msra.mxu1 %v4251_v23 }
 0x27b   :  { %3506 = vmatprep.subr.bf16.mxu1 %v3867_v3 }
 0x27d   :  { %3499 = vmatmul.mubr.msk.bf16.vlgmr.msra.gmra.mrb[24].mxu1 %vm731_vm1, %v3862_v4 }
 0x27e   :  { %3502 = vmatprep.mubr.msk.bf16.mxu1 %vm731_vm1, %v3863_v5  ;;  %3507 = vmatpush3.bf16.msra.mxu1 %v3867_v3 }
 0x27f   :  { %3538 = vmatprep.subr.bf16.mxu1 %v3868_v12 }
 0x282   :  { %v3628_v31 = vpop.f32.mrb[80].mxu0 }
 0x283   :  { %v1986_v45 = vpop.f32.mrb[81].mxu0 }
 0x284   :  { %v3629_v19 = vpop.f32.mrb[82].mxu0 }
 0x285   :  { %3503 = vmatmul.mubr.msk.bf16.gmra.mrb[28].mxu1 %vm731_vm1, %v3864_v24  ;;  %v2018_v47 = vpack.c.bf16 %v3629_v19, %v3628_v31  ;;  %v1989_v0 = vpop.f32.mrb[83].mxu0 }
 0x286   :  { %v2017_v1 = vpack.c.bf16 %v1989_v0, %v1986_v45  ;;  %v3888_v0 = vld [vmem:[%s4715_s6 + $0x30] sm:$0xff]  }
 0x28a   :  { %v3632_v2 = vpop.f32.mrb[84].mxu0 }
 0x28b   :  { %v2002_v42 = vpop.f32.mrb[85].mxu0 }
 0x28c   :  { %v3633_v6 = vpop.f32.mrb[86].mxu0 }
 0x28d   :  { %v2020_v7 = vpack.c.bf16 %v3633_v6, %v3632_v2  ;;  %v2005_v8 = vpop.f32.mrb[87].mxu0  ;;  %v3890_v2 = vld [vmem:[%s4717_s8] sm:$0xff]   ;;  %v3892_v6 = vld [vmem:[%s4717_s8 + $0x10] sm:$0xff]  }
 0x28e   :  { %v2019_v9 = vpack.c.bf16 %v2005_v8, %v2002_v42  ;;  %v3891_v42 = vld [vmem:[%s4717_s8 + $0x8] sm:$0xff]  }
 0x350   :  { %v3500_v3 = vpop.f32.mrb[24].mxu1 }
 0x351   :  { %v1170_v4 = vpop.f32.mrb[25].mxu1 }
 0x352   :  { %v3501_v5 = vpop.f32.mrb[26].mxu1 }
 0x353   :  { %v1202_v24 = vpack.c.bf16 %v3501_v5, %v3500_v3  ;;  %v1173_v43 = vpop.f32.mrb[27].mxu1 }
 0x354   :  { %v1201_v51 = vpack.c.bf16 %v1173_v43, %v1170_v4 }
 0x356   :  { %3508 = vmatprep.mubr.msk.bf16.mxu1 %vm934_vm2, %v1201_v51 }
 0x357   :  { %3509 = vmatmul.mubr.msk.bf16.vlgmr.msra.gmra.mrb[16].mxu1 %vm934_vm2, %v1202_v24 }
 0x358   :  { %3539 = vmatpush3.bf16.msra.mxu1 %v3868_v12  ;;  %v3504_v36 = vpop.f32.mrb[28].mxu1  ;;  %v3870_v12 = vld [vmem:[%s4713_s4 + $0x28] sm:$0xff]  }
 0x359   :  { %v1186_v58 = vpop.f32.mrb[29].mxu1  ;;  %3570 = vmatprep.subr.bf16.mxu1 %v3869_v26 }
 0x35a   :  { %v3505_v61 = vpop.f32.mrb[30].mxu1 }
 0x35b   :  { %v1204_v31 = vpack.c.bf16 %v3505_v61, %v3504_v36  ;;  %v1189_v45 = vpop.f32.mrb[31].mxu1 }
 0x35c   :  { %v1203_v19 = vpack.c.bf16 %v1189_v45, %v1186_v58 }
 0x35e   :  { %3512 = vmatprep.mubr.msk.bf16.mxu1 %vm934_vm2, %v1203_v19 }
 0x35f   :  { %3513 = vmatmul.mubr.msk.bf16.gmra.mrb[20].mxu1 %vm934_vm2, %v1204_v31 }
 0x360   :  { %3540 = vmatprep.mubr.msk.bf16.mxu1 %vm934_vm2, %v1405_v16 }
 0x367   :  { %3541 = vmatmul.mubr.msk.bf16.vlgmr.msra.gmra.mrb[16].mxu1 %vm934_vm2, %v1406_v57 }
 0x368   :  { %3571 = vmatpush3.bf16.msra.mxu1 %v3869_v26  ;;  %3544 = vmatprep.mubr.msk.bf16.mxu1 %vm934_vm2, %v1407_v17 }
 0x369   :  { %3602 = vmatprep.subr.bf16.mxu1 %v3870_v12 }
 0x36f   :  { %3545 = vmatmul.mubr.msk.bf16.gmra.mrb[20].mxu1 %vm934_vm2, %v1408_v27 }
 0x370   :  { %3572 = vmatprep.mubr.msk.bf16.mxu1 %vm934_vm2, %v1609_v21 }
 0x377   :  { %3573 = vmatmul.mubr.msk.bf16.vlgmr.msra.gmra.mrb[16].mxu1 %vm934_vm2, %v1610_v32 }
 0x378   :  { %3603 = vmatpush3.bf16.msra.mxu1 %v3870_v12  ;;  %3576 = vmatprep.mubr.msk.bf16.mxu1 %vm934_vm2, %v1611_v20 }
 0x379   :  { %3634 = vmatprep.subr.bf16.mxu1 %v3871_v50 }
 0x37f   :  { %3577 = vmatmul.mubr.msk.bf16.gmra.mrb[20].mxu1 %vm934_vm2, %v1612_v13 }
 0x380   :  { %3604 = vmatprep.mubr.msk.bf16.mxu1 %vm934_vm2, %v1813_v53  ;;  %v3884_v53 = vld [vmem:[%s4715_s6 + $0x10] sm:$0xff]  }
 0x387   :  { %3605 = vmatmul.mubr.msk.bf16.vlgmr.msra.gmra.mrb[16].mxu1 %vm934_vm2, %v1814_v48  ;;  %v3883_v48 = vld [vmem:[%s4715_s6 + $0x8] sm:$0xff]  }
 0x388   :  { %3635 = vmatpush3.bf16.msra.mxu1 %v3871_v50  ;;  %3608 = vmatprep.mubr.msk.bf16.mxu1 %vm934_vm2, %v1815_v59  ;;  %v3886_v59 = vld [vmem:[%s4715_s6 + $0x20] sm:$0xff]  }
 0x389   :  { %3644 = vmatprep.subr.bf16.mxu1 %v4189_v49  ;;  %3711 = vmatpush3.bf16.msra.mxu0 %v3883_v48  ;;  %v3893_v48 = vld [vmem:[%s4717_s8 + $0x18] sm:$0xff]   ;;  %s2892_s8 = sshll.u32 %s3920_s11, 4  ;;  %s2893_s8 = int_to_ptr.vmem [resolvable:$true] %s2892_s8 }
 0x38a   :  { %3712 = vmatprep.subr.bf16.mxu0 %v3918_v46  ;;  %p3899_p1 = scmp.lt.s32.totalorder %s2893_s8, %s2893_s8 }
 0x38d   :  { %3713 = vmatpush3.bf16.msra.mxu0 %v3884_v53  ;;  %v3157_v53 = vld [vmem:[%s4716_s7] ss:$0 sm:$0xff]  ;;  %s3894_s7 = scalar_lea.vmem %s2893_s8, 32 }
 0x38e   :  { %3714 = vmatprep.subr.bf16.mxu0 %v3918_v46  ;;  %p3895_p0 = scmp.ne.s32.totalorder %s2893_s8, %s3894_s7  ;;  %p3900_p2 = scmp.lt.s32.totalorder %s3894_s7, %s3894_s7 }
 0x38f   :  { %3609 = vmatmul.mubr.msk.bf16.gmra.mrb[20].mxu1 %vm934_vm2, %v1816_v41  ;;  %v3885_v41 = vld [vmem:[%s4715_s6 + $0x18] sm:$0xff]  }
 0x390   :  { %3636 = vmatprep.mubr.msk.bf16.mxu1 %vm934_vm2, %v2017_v1  ;;  %v3889_v1 = vld [vmem:[%s4715_s6 + $0x38] sm:$0xff]   ;;  %p3901_p3 = por %p3900_p2, %p3899_p1 }
 0x391   :  { %3715 = vmatpush3.bf16.msra.mxu0 %v3885_v41 }
 0x392   :  { %3716 = vmatprep.subr.bf16.mxu0 %v3918_v46  ;;  %p3902_p4 = pnand %p3901_p3, %p3895_p0 }
 0x395   :  { %3717 = vmatpush3.bf16.msra.mxu0 %v3886_v59 }
 0x396   :  { %3718 = vmatprep.subr.bf16.mxu0 %v3918_v46 }
 0x397   :  { %3637 = vmatmul.mubr.msk.bf16.vlgmr.msra.gmra.mrb[16].mxu1 %vm934_vm2, %v2018_v47  ;;  %v3887_v47 = vld [vmem:[%s4715_s6 + $0x28] sm:$0xff]  }
 0x398   :  { %3645 = vmatpush3.bf16.msra.mxu1 %v4189_v49  ;;  %3640 = vmatprep.mubr.msk.bf16.mxu1 %vm934_vm2, %v2019_v9  ;;  %v3880_v49 = vld [vmem:[%s4713_s4 + $0x38] sm:$0xff]   ;;  %v3156_v9 = vld [vmem:[%s4714_s5] ss:$0 sm:$0xff] }
 0x399   :  { %3646 = vmatprep.subr.bf16.mxu1 %v4210_v34  ;;  %3719 = vmatpush3.bf16.msra.mxu0 %v3887_v47 }
 0x39a   :  { %3720 = vmatprep.subr.bf16.mxu0 %v3918_v46 }
 0x39c   :  { %3647 = vmatpush3.bf16.msra.mxu1 %v4210_v34  ;;  %v3874_v34 = vld [vmem:[%s4712_s3 + $0xf0] sm:$0xff]  }
 0x39d   :  { %3648 = vmatprep.subr.bf16.mxu1 %v4207_v10  ;;  %3721 = vmatpush3.bf16.msra.mxu0 %v3888_v0 }
 0x39e   :  { %3722 = vmatprep.subr.bf16.mxu0 %v3918_v46 }
 0x39f   :  { %3641 = vmatmul.mubr.msk.bf16.gmra.mrb[20].mxu1 %vm934_vm2, %v2020_v7  ;;  %v2546_v7 = vlaneseq }
 0x3a0   :  { %3649 = vmatpush3.bf16.msra.mxu1 %v4207_v10  ;;  %3658 = vmatprep.mubr.msk.bf16.mxu1 %vm731_vm1, %v3872_v52  ;;  %v3873_v10 = vld [vmem:[%s4712_s3 + $0xe8] sm:$0xff]  }
 0x3a1   :  { %3650 = vmatprep.subr.bf16.mxu1 %v4238_v63  ;;  %3723 = vmatpush3.bf16.msra.mxu0 %v3889_v1  ;;  %v2547_v8 = vshrl.u32 %v2546_v7, 7 }
 0x3a3   :  { %v2550_v44 = vadd.s32 24, %v2547_v8  ;;  %v2554_v19 = vadd.s32 56, %v2547_v8 }
 0x3a4   :  { %3651 = vmatpush3.bf16.msra.mxu1 %v4238_v63  ;;  %v3881_v63 = vld [vmem:[%s4713_s4 + $0x40] sm:$0xff]  }
 0x3a5   :  { %3652 = vmatprep.subr.bf16.mxu1 %v4233_v40  ;;  %v2580_v43 = vand.u32 31, %v2550_v44 }
 0x3a7   :  { %vm2654_vm4 = vcmp.lt.s32.totalorder %v2580_v43, 25 }
 0x3a8   :  { %3653 = vmatpush3.bf16.msra.mxu1 %v4233_v40  ;;  %v3875_v40 = vld [vmem:[%s4712_s3 + $0xf8] sm:$0xff]  }
 0x3a9   :  { %3654 = vmatprep.subr.bf16.mxu1 %v4255_v54 }
 0x3ac   :  { %3655 = vmatpush3.bf16.msra.mxu1 %v4255_v54 }
 0x3ad   :  { %3656 = vmatprep.subr.bf16.mxu1 %v4251_v23 }
 0x3b0   :  { %3657 = vmatpush3.bf16.msra.mxu1 %v4251_v23  ;;  %v3692_v23 = vpop.f32.mrb[88].mxu0 }
 0x3b1   :  { %3666 = vmatprep.subr.bf16.mxu1 %v3880_v49  ;;  %v2394_v54 = vpop.f32.mrb[89].mxu0 }
 0x3b2   :  { %v3693_v55 = vpop.f32.mrb[90].mxu0 }
 0x3b3   :  { %3659 = vmatmul.mubr.msk.bf16.vlgmr.msra.gmra.mrb[32].mxu1 %vm731_vm1, %v3873_v10  ;;  %v2426_v57 = vpack.c.bf16 %v3693_v55, %v3692_v23  ;;  %v2397_v56 = vpop.f32.mrb[91].mxu0 }
 0x3b4   :  { %3662 = vmatprep.mubr.msk.bf16.mxu1 %vm731_vm1, %v3874_v34  ;;  %3667 = vmatpush3.bf16.msra.mxu1 %v3880_v49  ;;  %v2425_v16 = vpack.c.bf16 %v2397_v56, %v2394_v54  ;;  %v3696_v60 = vpop.f32.mrb[92].mxu0  ;;  %v2608_v54 = vand.u32 31, %v2554_v19 }
 0x3b5   :  { %3698 = vmatprep.subr.bf16.mxu1 %v3881_v63  ;;  %v2410_v62 = vpop.f32.mrb[93].mxu0 }
 0x3b6   :  { %v3697_v25 = vpop.f32.mrb[94].mxu0  ;;  %vm2658_vm5 = vcmp.lt.s32.totalorder %v2608_v54, 25 }
 0x3b7   :  { %v2428_v27 = vpack.c.bf16 %v3697_v25, %v3696_v60  ;;  %v2413_v28 = vpop.f32.mrb[95].mxu0 }
 0x3b8   :  { %v2427_v17 = vpack.c.bf16 %v2413_v28, %v2410_v62 }
 0x3bb   :  { %3663 = vmatmul.mubr.msk.bf16.gmra.mrb[36].mxu1 %vm731_vm1, %v3875_v40 }
 0x486   :  { %v3660_v29 = vpop.f32.mrb[32].mxu1 }
 0x487   :  { %v2190_v30 = vpop.f32.mrb[33].mxu1 }
 0x488   :  { %v3661_v15 = vpop.f32.mrb[34].mxu1 }
 0x489   :  { %v2222_v32 = vpack.c.bf16 %v3661_v15, %v3660_v29  ;;  %v2193_v33 = vpop.f32.mrb[35].mxu1 }
 0x48a   :  { %v2221_v21 = vpack.c.bf16 %v2193_v33, %v2190_v30 }
 0x48c   :  { %3668 = vmatprep.mubr.msk.bf16.mxu1 %vm934_vm2, %v2221_v21 }
 0x48d   :  { %3669 = vmatmul.mubr.msk.bf16.vlgmr.msra.gmra.mrb[16].mxu1 %vm934_vm2, %v2222_v32 }
 0x48e   :  { %3699 = vmatpush3.bf16.msra.mxu1 %v3881_v63  ;;  %v3664_v18 = vpop.f32.mrb[36].mxu1 }
 0x48f   :  { %v2206_v35 = vpop.f32.mrb[37].mxu1  ;;  %3728 = vmatprep.subr.bf16.mxu1 %v3918_v46 }
 0x490   :  { %v3665_v37 = vpop.f32.mrb[38].mxu1 }
 0x491   :  { %v2224_v13 = vpack.c.bf16 %v3665_v37, %v3664_v18  ;;  %v2209_v39 = vpop.f32.mrb[39].mxu1 }
 0x492   :  { %v2223_v20 = vpack.c.bf16 %v2209_v39, %v2206_v35 }
 0x494   :  { %3672 = vmatprep.mubr.msk.bf16.mxu1 %vm934_vm2, %v2223_v20 }
 0x495   :  { %3673 = vmatmul.mubr.msk.bf16.gmra.mrb[20].mxu1 %vm934_vm2, %v2224_v13 }
 0x496   :  { %3700 = vmatprep.mubr.msk.bf16.mxu1 %vm934_vm2, %v2425_v16 }
 0x49d   :  { %3701 = vmatmul.mubr.msk.bf16.vlgmr.msra.gmra.mrb[16].mxu1 %vm934_vm2, %v2426_v57 }
 0x49e   :  { %3704 = vmatprep.mubr.msk.bf16.mxu1 %vm934_vm2, %v2427_v17  ;;  %3729 = vmatpush3.bf16.msra.mxu1 %v3890_v2 }
 0x49f   :  { %3730 = vmatprep.subr.bf16.mxu1 %v3918_v46 }
 0x4a2   :  { %3731 = vmatpush3.bf16.msra.mxu1 %v3891_v42 }
 0x4a3   :  { %3732 = vmatprep.subr.bf16.mxu1 %v3918_v46 }
 0x4a5   :  { %3705 = vmatmul.mubr.msk.bf16.gmra.mrb[20].mxu1 %vm934_vm2, %v2428_v27 }
 0x4a6   :  { %3736 = vmatprep.mubr.msk.bf16.mxu1 %vm3919_vm3, %v3918_v46  ;;  %3733 = vmatpush3.bf16.msra.mxu1 %v3892_v6  ;;  %v3166_v6 = vld [vmem:[%s4718_s9] ss:$0 sm:$0xff] }
 0x4a7   :  { %3734 = vmatprep.subr.bf16.mxu1 %v3918_v46 }
 0x4aa   :  { %3735 = vmatpush3.bf16.msra.mxu1 %v3893_v48 }
 0x570   :  { %v3702_v11 = vpop.f32.mrb[16].mxu1 }
 0x571   :  { %v2484_v14 = vpop.f32.mrb[17].mxu1  ;;  %v2532_v24 = vadd.f32 %v3702_v11, %v3156_v9 }
 0x572   :  { %v2530_v22 = vadd.f32 %v3156_v9, %v2484_v14  ;;  %v3703_v3 = vpop.f32.mrb[18].mxu1 }
 0x573   :  { %v2533_v4 = vadd.f32 %v3703_v3, %v3156_v9  ;;  %v2487_v5 = vpop.f32.mrb[19].mxu1  ;;  %v2540_v61 = vmax.f32 %v2532_v24, 0.0 }
 0x574   :  { %v2531_v51 = vadd.f32 %v3156_v9, %v2487_v5  ;;  %v2538_v26 = vmax.f32 %v2530_v22, 0.0 }
 0x575   :  { %v2541_v58 = vmax.f32 %v2533_v4, 0.0 }
 0x576   :  { %v2539_v36 = vmax.f32 %v2531_v51, 0.0 }
 0x577   :  { %v2662_v10 = vsel %vm2654_vm4, %v2541_v58, 0.0 }
 0x578   :  { %v2667_v31 = vadd.f32 %v2539_v36, %v2538_v26  ;;  %v3706_v45 = vpop.f32.mrb[20].mxu1 }
 0x579   :  { %v2500_v12 = vpop.f32.mrb[21].mxu1  ;;  %v2536_v23 = vadd.f32 %v3706_v45, %v3156_v9 }
 0x57a   :  { %v2668_v50 = vadd.f32 %v2667_v31, %v2540_v61  ;;  %v2534_v52 = vadd.f32 %v3156_v9, %v2500_v12  ;;  %v3707_v49 = vpop.f32.mrb[22].mxu1 }
 0x57b   :  { %v2537_v34 = vadd.f32 %v3707_v49, %v3156_v9  ;;  %v2503_v40 = vpop.f32.mrb[23].mxu1  ;;  %v2544_v25 = vmax.f32 %v2536_v23, 0.0 }
 0x57c   :  { %v2669_v63 = vadd.f32 %v2668_v50, %v2662_v10  ;;  %v2535_v55 = vadd.f32 %v3156_v9, %v2503_v40  ;;  %v2542_v56 = vmax.f32 %v2534_v52, 0.0 }
 0x57d   :  { %v2545_v60 = vmax.f32 %v2537_v34, 0.0 }
 0x57e   :  { %v2670_v57 = vrot.slane %v2669_v63, 4  ;;  %v2543_v16 = vmax.f32 %v2535_v55, 0.0 }
 0x57f   :  { %v2666_v17 = vsel %vm2658_vm5, %v2545_v60, 0.0 }
 0x580   :  { %v2671_v62 = vadd.f32 %v2670_v57, %v2669_v63  ;;  %v2676_v27 = vadd.f32 %v2543_v16, %v2542_v56 }
 0x582   :  { %v2677_v28 = vadd.f32 %v2676_v27, %v2544_v25  ;;  %v2672_v29 = vrot.slane %v2671_v62, 2 }
 0x584   :  { %v2678_v30 = vadd.f32 %v2677_v28, %v2666_v17  ;;  %v2673_v32 = vadd.f32 %v2672_v29, %v2671_v62 }
 0x586   :  { %v2679_v15 = vrot.slane %v2678_v30, 4  ;;  %v2674_v18 = vrot.slane %v2673_v32, 1 }
 0x588   :  { %v2680_v33 = vadd.f32 %v2679_v15, %v2678_v30  ;;  %v2675_v13 = vadd.f32 %v2674_v18, %v2673_v32 }
 0x58a   :  { %v2681_v21 = vrot.slane %v2680_v33, 2 }
 0x58c   :  { %v2682_v35 = vadd.f32 %v2681_v21, %v2680_v33 }
 0x58e   :  { %v2683_v37 = vrot.slane %v2682_v35, 1 }
 0x590   :  { %v2684_v39 = vadd.f32 %v2683_v37, %v2682_v35 }
 0x592   :  { %v2686_v20 = vsel %vm2685_vm6, %v2675_v13, %v2684_v39 }
 0x593   :  { %v2687_v38 = vmul.f32 0.04, %v2686_v20 }
 0x595   :  { %v2688_v46 = vpack.c.bf16 %v2687_v38, %v2687_v38 }
 0x597   :  { %3725 = vmatmul.mubr.bf16.vlgmr.msra.gmra.mrb[96].mxu0 %v2688_v46 }
 0x66a   :  { %v2794_v41 = vpop.f32.mrb[96].mxu0 }
 0x66b   :  { %v2795_v59 = vadd.f32 %v3157_v53, %v2794_v41  ;;  %v3726_v47 = vpop.f32.mrb[97].mxu0 }
 0x66c   :  { %v2797_v0 = vpop.f32.mrb[98].mxu0 }
 0x66d   :  { %v2800_v1 = vmax.f32 %v2795_v59, 0.0  ;;  %v3727_v2 = vpop.f32.mrb[99].mxu0 }
 0x66f   :  { %v2801_v42 = vpack.c.bf16 %v2800_v1, %v2800_v1 }
 0x671   :  { %3737 = vmatmul.mubr.msk.bf16.vlgmr.msra.gmra.mrb[40].mxu1 %vm2841_vm7, %v2801_v42 }
 0x744   :  { %v2879_v7 = vpop.f32.mrb[40].mxu1 }
 0x745   :  { %v2880_v8 = vadd.f32 %v3166_v6, %v2879_v7  ;;  %v3738_v9 = vpop.f32.mrb[41].mxu1 }
 0x746   :  { %v2882_v11 = vpop.f32.mrb[42].mxu1 }
 0x747   :  { %2885 = vst [vmem:[#allocation2] sm:$0x3] %v2880_v8  ;;  %v3739_v44 = vpop.f32.mrb[43].mxu1 }
 0x748   :  { %3905 = shalt.err (!%p3902_p4)
}
 0x749   :  { %s3906_s9 = scalar_lea.hbm %s4719_s10, 32 }
 0x74a   :  { %p3907_p5 = scmp.ne.s32.totalorder %s4719_s10, %s3906_s9  ;;  %p3910_p6 = scmp.lt.u32.totalorder %s3906_s9, %s4719_s10 }
 0x74c   :  { %p3912_p7 = pnand %p3910_p6, %p3907_p5 }
 0x74e   :  { %3915 = shalt.err (!%p3912_p7)
}
 0x74f   :  { %2895 = dma.vmem_to_hbm [thread:$0]  %s2893_s8, 32, %s4719_s10, [#allocation3]  }
 0x750   :  { %3916 = dma.done.wait [#allocation3], 32  }
 0x751   :  { %3917 = vsyncadd [#allocation3], 4294967264 }
 0x752   :  { %2899 = vsyncpa [#allocation3], 1 }

</bundles_post_ra>
